<compile_context>
chip_gen: v7x
topology: tpu7x:2x2x1
jax: 0.10.0
libtpu: 0.0.40
codegen_flags: <defaults>
</compile_context>

<pallas_src>
import math

import jax
import jax.numpy as jnp
import numpy as np
from jax.experimental import pallas as pl
from jax.experimental.pallas import tpu as pltpu

BLOCK_SIZE = 8

_FUSED_MAX_C = 8                      # fused path: all channels live in one block
_MAX_FULL = 256                       # <= this: one full-extent spatial tile
_BIG_TILE = 128                       # kron matmul tile for large spatial dims
_TARGET_STEP_BYTES = 4 * 1024 * 1024  # ~4 MiB of input per grid step
_UNROLL_CAP = 64                      # max (nb * h_subtiles * channels) unroll
_VMEM_LIMIT = 48 * 1024 * 1024        # safe scoped-VMEM cap, incl. v7x (64 MiB)


def _round_up(x, m):
    return -(-x // m) * m


def _largest_divisor_leq(n, cap):
    cap = max(1, min(cap, n))
    for k in range(cap, 0, -1):
        if n % k == 0:
            return k
    return 1


def _make_kron_ops(T, th, tw):
    """Per-channel block-diagonal operators for the two-sided 8x8 transform.

    a_ops[ch]  = kron(I_{th/8}, T_ch)      (left multiply)
    bt_ops[ch] = kron(I_{tw/8}, T_ch)^T    (right multiply, pre-transposed)
    """
    c = T.shape[0]
    eye_h = jnp.eye(th // BLOCK_SIZE, dtype=T.dtype)
    eye_w = jnp.eye(tw // BLOCK_SIZE, dtype=T.dtype)
    a_ops = jnp.einsum("ij,cab->ciajb", eye_h, T).reshape(c, th, th)
    bt_ops = jnp.einsum("ij,cba->ciajb", eye_w, T).reshape(c, tw, tw)
    return a_ops, bt_ops


# --------------------------------------------------------------------------
# Fused kernel: block transform + 1x1 conv -> ReLU -> 1x1 conv -> sigmoid gate
# --------------------------------------------------------------------------
def _fused_kernel(x_ref, a_ref, bt_ref, w1_ref, b1_ref, w2_ref, b2_ref, o_ref):
    nb, c = x_ref.shape[0], x_ref.shape[1]
    th = a_ref.shape[-1]
    kh = x_ref.shape[2] // th          # h sub-tiles grouped into this block

    for i in range(nb):                # static unroll (nb * kh * c is capped)
        for j in range(kh):
            r = j * th
            # per-channel two-sided transform: (th,th)@(th,tw) then (th,tw)@(tw,tw)
            t = []
            for ch in range(c):
                xs = x_ref[i, ch, r:r + th, :]
                z = jnp.dot(a_ref[ch], xs, preferred_element_type=jnp.float32)
                t.append(jnp.dot(z, bt_ref[ch], preferred_element_type=jnp.float32))
            # 1x1 conv -> ReLU  (channel mix via scalar-broadcast VPU FMAs)
            h1 = []
            for o in range(c):
                acc = t[0] * w1_ref[o, 0]
                for ci in range(1, c):
                    acc = acc + t[ci] * w1_ref[o, ci]
                h1.append(jnp.maximum(acc + b1_ref[o], 0.0))
            # 1x1 conv -> sigmoid (EUP exp + approx reciprocal) -> gate -> store
            for o in range(c):
                acc = h1[0] * w2_ref[o, 0]
                for ci in range(1, c):
                    acc = acc + h1[ci] * w2_ref[o, ci]
                q = pl.reciprocal(1.0 + jnp.exp(-(acc + b2_ref[o])), approx=True)
                o_ref[i, o, r:r + th, :] = (t[o] * q).astype(o_ref.dtype)


def _fused_forward(x, T, w1, b1, w2, b2):
    b, c, h, w = x.shape
    dt = x.dtype
    itemsize = dt.itemsize
    h8 = _round_up(h, BLOCK_SIZE)
    w8 = _round_up(w, BLOCK_SIZE)

    # Per-matmul (kron-operator) tiles: full extent when small, 128 otherwise.
    th = h8 if h8 <= _MAX_FULL else _BIG_TILE      # sublane dim (multiple of 8)
    tw = w8 if w8 <= _MAX_FULL else _BIG_TILE      # lane dim (128 or full)

    # Group kh h-tiles (and nb batch elements) per grid step to reach ~4 MiB
    # input per step without growing the kron operators.
    per_htile = c * th * tw * itemsize
    n_ht = -(-h8 // th)
    kh = _largest_divisor_leq(
        n_ht, max(1, min(_TARGET_STEP_BYTES // per_htile, _UNROLL_CAP // c)))
    bh = kh * th
    step_bytes = per_htile * kh
    nb = _largest_divisor_leq(
        b, max(1, min(_TARGET_STEP_BYTES // step_bytes, _UNROLL_CAP // (kh * c))))

    hp = _round_up(h8, bh)
    wp = _round_up(w8, tw)
    if hp != h or wp != w:
        # Zero padding is part of the module's semantics at 8x8-block
        # granularity; extra tile padding transforms independently and is
        # dropped by the masked output stores / final slice.
        x = jnp.pad(x, ((0, 0), (0, 0), (0, hp - h), (0, wp - w)))

    a_ops, bt_ops = _make_kron_ops(T.astype(dt), th, tw)
    w1f = w1.astype(jnp.float32)
    b1f = b1.astype(jnp.float32)
    w2f = w2.astype(jnp.float32)
    b2f = b2.astype(jnp.float32)

    # Emit the crop straight from the kernel where the tiling rules allow it:
    # the sublane block (bh) is always a multiple of 8, the lane block must be
    # a multiple of 128 or cover the full output width.
    out_h = h
    out_w = w if (tw % 128 == 0 or w == wp) else wp

    grid = (b // nb, hp // bh, wp // tw)
    smem = pltpu.MemorySpace.SMEM
    out = pl.pallas_call(
        _fused_kernel,
        out_shape=jax.ShapeDtypeStruct((b, c, out_h, out_w), dt),
        grid=grid,
        in_specs=[
            pl.BlockSpec((nb, c, bh, tw), lambda bi, hi, wi: (bi, 0, hi, wi)),
            # kron operators: constant index maps -> resident in VMEM
            pl.BlockSpec((c, th, th), lambda bi, hi, wi: (0, 0, 0)),
            pl.BlockSpec((c, tw, tw), lambda bi, hi, wi: (0, 0, 0)),
            # 1x1-conv weights / biases: tiny, scalar-read from SMEM
            pl.BlockSpec(memory_space=smem),
            pl.BlockSpec(memory_space=smem),
            pl.BlockSpec(memory_space=smem),
            pl.BlockSpec(memory_space=smem),
        ],
        out_specs=pl.BlockSpec((nb, c, bh, tw), lambda bi, hi, wi: (bi, 0, hi, wi)),
        compiler_params=pltpu.CompilerParams(
            dimension_semantics=("parallel", "parallel", "parallel"),
            vmem_limit_bytes=_VMEM_LIMIT),
    )(x, a_ops, bt_ops, w1f, b1f, w2f, b2f)

    if out_w != w:
        out = out[:, :, :, :w]
    return out


# --------------------------------------------------------------------------
# Fallback for wide channel counts (C > _FUSED_MAX_C): two-kernel pipeline
# --------------------------------------------------------------------------
def _spatial_tile(dim, max_full=_MAX_FULL, big_tile=_BIG_TILE):
    d8 = _round_up(dim, BLOCK_SIZE)
    if d8 <= max_full:
        return d8, d8
    return big_tile, _round_up(d8, big_tile)


def _block_transform_kernel(x_ref, a_ref, bt_ref, o_ref):
    z = jnp.dot(a_ref[...], x_ref[...], preferred_element_type=jnp.float32)
    y = jnp.dot(z, bt_ref[...], preferred_element_type=jnp.float32)
    o_ref[...] = y.astype(o_ref.dtype)


def _block_transform(x_padded, T, th, tw):
    b, c, hp, wp = x_padded.shape
    a_ops, bt_ops = _make_kron_ops(T.astype(x_padded.dtype), th, tw)
    grid = (c, b, hp // th, wp // tw)  # channel outermost -> operators resident
    return pl.pallas_call(
        _block_transform_kernel,
        out_shape=jax.ShapeDtypeStruct((b, c, hp, wp), x_padded.dtype),
        grid=grid,
        in_specs=[
            pl.BlockSpec((None, None, th, tw),
                         lambda ci, bi, hi, wi: (bi, ci, hi, wi)),
            pl.BlockSpec((None, th, th), lambda ci, bi, hi, wi: (ci, 0, 0)),
            pl.BlockSpec((None, tw, tw), lambda ci, bi, hi, wi: (ci, 0, 0)),
        ],
        out_specs=pl.BlockSpec((None, None, th, tw),
                               lambda ci, bi, hi, wi: (bi, ci, hi, wi)),
        compiler_params=pltpu.CompilerParams(
            dimension_semantics=("parallel",) * 4,
            vmem_limit_bytes=_VMEM_LIMIT),
    )(x_padded, a_ops, bt_ops)


def _choose_hw_tile(hw, c, itemsize):
    """Lane-dense tile along flattened hw; (c, t_hw) block targets ~4 MiB."""
    budget = max(128, (4 * 1024 * 1024) // (c * itemsize))
    if hw <= budget:
        return hw                                  # full extent: always legal
    return max(128, (budget // 128) * 128)         # 128-multiple; grid ceil-divides


def _quant_gate_kernel(t_ref, w1_ref, b1_ref, w2_ref, b2_ref, o_ref):
    t = t_ref[...]                                                    # (c, hw_tile)
    h1 = jnp.dot(w1_ref[...], t, preferred_element_type=jnp.float32) + b1_ref[...]
    h1 = jnp.maximum(h1, 0.0)
    h2 = jnp.dot(w2_ref[...], h1, preferred_element_type=jnp.float32) + b2_ref[...]
    q = pl.reciprocal(1.0 + jnp.exp(-h2), approx=True)
    o_ref[...] = (t * q).astype(o_ref.dtype)


def _quantize_and_gate(transformed, w1, b1, w2, b2):
    b, c, hp, wp = transformed.shape
    hw = hp * wp
    t_hw = _choose_hw_tile(hw, c, transformed.dtype.itemsize)
    t_flat = transformed.reshape(b, c, hw)         # contiguous -> free reshape
    b1c = b1.reshape(c, 1).astype(jnp.float32)
    b2c = b2.reshape(c, 1).astype(jnp.float32)
    out = pl.pallas_call(
        _quant_gate_kernel,
        out_shape=jax.ShapeDtypeStruct((b, c, hw), transformed.dtype),
        grid=(b, pl.cdiv(hw, t_hw)),
        in_specs=[
            pl.BlockSpec((None, c, t_hw), lambda bi, ti: (bi, 0, ti)),
            pl.BlockSpec((c, c), lambda bi, ti: (0, 0)),
            pl.BlockSpec((c, 1), lambda bi, ti: (0, 0)),
            pl.BlockSpec((c, c), lambda bi, ti: (0, 0)),
            pl.BlockSpec((c, 1), lambda bi, ti: (0, 0)),
        ],
        out_specs=pl.BlockSpec((None, c, t_hw), lambda bi, ti: (bi, 0, ti)),
        compiler_params=pltpu.CompilerParams(
            dimension_semantics=("parallel", "parallel"),
            vmem_limit_bytes=_VMEM_LIMIT),
    )(t_flat, w1.astype(jnp.float32), b1c, w2.astype(jnp.float32), b2c)
    return out.reshape(b, c, hp, wp)


def _two_kernel_forward(x, T, w1, b1, w2, b2):
    b, c, h, w = x.shape
    th, hp = _spatial_tile(h)
    tw, wp = _spatial_tile(w)
    if hp != h or wp != w:
        x = jnp.pad(x, ((0, 0), (0, 0), (0, hp - h), (0, wp - w)))
    transformed = _block_transform(x, T, th, tw)
    gated = _quantize_and_gate(transformed, w1, b1, w2, b2)
    if hp != h or wp != w:
        gated = gated[:, :, :h, :w]
    return gated


# --------------------------------------------------------------------------
# Full forward
# --------------------------------------------------------------------------
def avif_adaptive_transform(x, params):
    # Note: the module's `inverse_weights` parameter is unused in forward().
    c = x.shape[1]
    args = (x, params["transform_weights"], params["q1_w"], params["q1_b"],
            params["q2_w"], params["q2_b"])
    if c <= _FUSED_MAX_C:
        return _fused_forward(*args)
    # TODO(synk): fuse the 1x1-conv/gate epilogue for wide channel counts too.
    return _two_kernel_forward(*args)


# --------------------------------------------------------------------------
# Pure-JAX reference (mirrors the PyTorch forward) for a correctness check
# --------------------------------------------------------------------------
def reference_forward(x, params):
    b, c, h, w = x.shape
    bs = BLOCK_SIZE
    h_pad = (bs - h % bs) % bs
    w_pad = (bs - w % bs) % bs
    xp = jnp.pad(x, ((0, 0), (0, 0), (0, h_pad), (0, w_pad)))
    hp, wp = xp.shape[2], xp.shape[3]
    nh, nw = hp // bs, wp // bs
    patches = xp.reshape(b, c, nh, bs, nw, bs).transpose(0, 1, 2, 4, 3, 5)
    T = params["transform_weights"]
    y = jnp.einsum("cij,bcnmjk->bcnmik", T, patches)
    y = jnp.einsum("bcnmik,clk->bcnmil", y, T)                      # T @ P @ T^T
    ts = y.transpose(0, 1, 2, 4, 3, 5).reshape(b, c, hp, wp)[:, :, :h, :w]

    def conv1x1(v, wgt, bias):
        return jnp.einsum("oi,bihw->bohw", wgt, v) + bias[None, :, None, None]

    q = jax.nn.sigmoid(
        conv1x1(jnp.maximum(conv1x1(ts, params["q1_w"], params["q1_b"]), 0.0),
                params["q2_w"], params["q2_b"]))
    return ts * q


if __name__ == "__main__":
    B, C, H, W = 2, 4, 16, 16
    key = jax.random.PRNGKey(0)
    keys = jax.random.split(key, 7)
    x = jax.random.normal(keys[0], (B, C, H, W), dtype=jnp.float32)

    params = {
        # nn.Parameter(torch.randn(channels, block_size, block_size))
        "transform_weights": jax.random.normal(keys[1], (C, BLOCK_SIZE, BLOCK_SIZE), jnp.float32),
        # inverse_weights exists in __init__ but is unused in forward()
        "inverse_weights": jax.random.normal(keys[2], (C, BLOCK_SIZE, BLOCK_SIZE), jnp.float32),
        # quantization = Conv2d(C,C,1) -> ReLU -> Conv2d(C,C,1) -> Sigmoid
        # 1x1 conv weights stored as (C_out, C_in); biases as (C,)
        "q1_w": jax.random.normal(keys[3], (C, C), jnp.float32) * 0.5,
        "q1_b": jax.random.normal(keys[4], (C,), jnp.float32) * 0.1,
        "q2_w": jax.random.normal(keys[5], (C, C), jnp.float32) * 0.5,
        "q2_b": jax.random.normal(keys[6], (C,), jnp.float32) * 0.1,
    }

    fwd = jax.jit(avif_adaptive_transform)

    # Small image, exact multiple of the 8x8 block size.
    out = jax.block_until_ready(fwd(x, params))
    ref = reference_forward(x, params)
    np.testing.assert_allclose(np.asarray(out), np.asarray(ref), rtol=2e-2, atol=2e-2)

    # Pad/crop path (H, W not multiples of the block size).
    x2 = jax.random.normal(keys[2], (1, C, 20, 12), dtype=jnp.float32)
    out2 = jax.block_until_ready(fwd(x2, params))
    np.testing.assert_allclose(np.asarray(out2),
                               np.asarray(reference_forward(x2, params)),
                               rtol=2e-2, atol=2e-2)

    # Larger-image path: 128-wide kron tiles, h sub-tile grouping, masked edge
    # stores emitting the cropped output directly.
    x3 = jax.random.normal(keys[3], (1, C, 260, 300), dtype=jnp.float32)
    out3 = jax.block_until_ready(fwd(x3, params))
    np.testing.assert_allclose(np.asarray(out3),
                               np.asarray(reference_forward(x3, params)),
                               rtol=2e-2, atol=2e-2)

    print("KERNEL_OK")
</pallas_src>

<mosaic_0001>
module attributes {stable_mosaic.version = 11 : i64} {
  func.func @_fused_kernel(%arg0: i32, %arg1: i32, %arg2: i32, %arg3: memref<2x4x16x16xf32, #tpu.memory_space<vmem>>, %arg4: memref<4x16x16xf32, #tpu.memory_space<vmem>>, %arg5: memref<4x16x16xf32, #tpu.memory_space<vmem>>, %arg6: memref<4x4xf32, #tpu.memory_space<smem>>, %arg7: memref<4xf32, #tpu.memory_space<smem>>, %arg8: memref<4x4xf32, #tpu.memory_space<smem>>, %arg9: memref<4xf32, #tpu.memory_space<smem>>, %arg10: memref<2x4x16x16xf32, #tpu.memory_space<vmem>>) attributes {dimension_semantics = [#tpu.dimension_semantics<parallel>, #tpu.dimension_semantics<parallel>, #tpu.dimension_semantics<parallel>], iteration_bounds = array<i64: 1, 1, 1>, scalar_prefetch = 0 : i64, scratch_operands = 0 : i64, tpu.core_type = #tpu.core_type<tc>, window_params = [{transform_indices = @transform_0, window_bounds = array<i64: 2, 4, 16, 16>}, {pipeline_mode = #tpu.pipeline_mode<synchronous>, transform_indices = @transform_1, window_bounds = array<i64: 4, 16, 16>}, {pipeline_mode = #tpu.pipeline_mode<synchronous>, transform_indices = @transform_2, window_bounds = array<i64: 4, 16, 16>}, {transform_indices = @transform_3, window_bounds = array<i64: 4, 4>}, {transform_indices = @transform_4, window_bounds = array<i64: 4>}, {transform_indices = @transform_5, window_bounds = array<i64: 4, 4>}, {transform_indices = @transform_6, window_bounds = array<i64: 4>}, {transform_indices = @transform_7, window_bounds = array<i64: 2, 4, 16, 16>}]} {
    %c0 = arith.constant 0 : index
    %c0_0 = arith.constant 0 : index
    %c0_1 = arith.constant 0 : index
    %c0_2 = arith.constant 0 : index
    %0 = vector.load %arg3[%c0, %c0_0, %c0_1, %c0_2] : memref<2x4x16x16xf32, #tpu.memory_space<vmem>>, vector<1x1x16x16xf32>
    %1 = vector.shape_cast %0 : vector<1x1x16x16xf32> to vector<16x16xf32>
    %c0_3 = arith.constant 0 : index
    %c0_4 = arith.constant 0 : index
    %c0_5 = arith.constant 0 : index
    %2 = vector.load %arg4[%c0_3, %c0_4, %c0_5] : memref<4x16x16xf32, #tpu.memory_space<vmem>>, vector<1x16x16xf32>
    %3 = vector.shape_cast %2 : vector<1x16x16xf32> to vector<16x16xf32>
    %cst = arith.constant dense<0.000000e+00> : vector<16x16xf32>
    %4 = tpu.matmul %3, %1, %cst {dimension_numbers = #tpu.dot_dimension_numbers<[1], [0], [0], [1], [0, 0, 1, 1], [], []>} : vector<16x16xf32>, vector<16x16xf32>, vector<16x16xf32> -> vector<16x16xf32>
    %c0_6 = arith.constant 0 : index
    %c0_7 = arith.constant 0 : index
    %c0_8 = arith.constant 0 : index
    %5 = vector.load %arg5[%c0_6, %c0_7, %c0_8] : memref<4x16x16xf32, #tpu.memory_space<vmem>>, vector<1x16x16xf32>
    %6 = vector.shape_cast %5 : vector<1x16x16xf32> to vector<16x16xf32>
    %cst_9 = arith.constant dense<0.000000e+00> : vector<16x16xf32>
    %7 = tpu.matmul %4, %6, %cst_9 {dimension_numbers = #tpu.dot_dimension_numbers<[1], [0], [0], [1], [0, 0, 1, 1], [], []>} : vector<16x16xf32>, vector<16x16xf32>, vector<16x16xf32> -> vector<16x16xf32>
    %c0_10 = arith.constant 0 : index
    %c1 = arith.constant 1 : index
    %c0_11 = arith.constant 0 : index
    %c0_12 = arith.constant 0 : index
    %8 = vector.load %arg3[%c0_10, %c1, %c0_11, %c0_12] : memref<2x4x16x16xf32, #tpu.memory_space<vmem>>, vector<1x1x16x16xf32>
    %9 = vector.shape_cast %8 : vector<1x1x16x16xf32> to vector<16x16xf32>
    %c1_13 = arith.constant 1 : index
    %c0_14 = arith.constant 0 : index
    %c0_15 = arith.constant 0 : index
    %10 = vector.load %arg4[%c1_13, %c0_14, %c0_15] : memref<4x16x16xf32, #tpu.memory_space<vmem>>, vector<1x16x16xf32>
    %11 = vector.shape_cast %10 : vector<1x16x16xf32> to vector<16x16xf32>
    %cst_16 = arith.constant dense<0.000000e+00> : vector<16x16xf32>
    %12 = tpu.matmul %11, %9, %cst_16 {dimension_numbers = #tpu.dot_dimension_numbers<[1], [0], [0], [1], [0, 0, 1, 1], [], []>} : vector<16x16xf32>, vector<16x16xf32>, vector<16x16xf32> -> vector<16x16xf32>
    %c1_17 = arith.constant 1 : index
    %c0_18 = arith.constant 0 : index
    %c0_19 = arith.constant 0 : index
    %13 = vector.load %arg5[%c1_17, %c0_18, %c0_19] : memref<4x16x16xf32, #tpu.memory_space<vmem>>, vector<1x16x16xf32>
    %14 = vector.shape_cast %13 : vector<1x16x16xf32> to vector<16x16xf32>
    %cst_20 = arith.constant dense<0.000000e+00> : vector<16x16xf32>
    %15 = tpu.matmul %12, %14, %cst_20 {dimension_numbers = #tpu.dot_dimension_numbers<[1], [0], [0], [1], [0, 0, 1, 1], [], []>} : vector<16x16xf32>, vector<16x16xf32>, vector<16x16xf32> -> vector<16x16xf32>
    %c0_21 = arith.constant 0 : index
    %c2 = arith.constant 2 : index
    %c0_22 = arith.constant 0 : index
    %c0_23 = arith.constant 0 : index
    %16 = vector.load %arg3[%c0_21, %c2, %c0_22, %c0_23] : memref<2x4x16x16xf32, #tpu.memory_space<vmem>>, vector<1x1x16x16xf32>
    %17 = vector.shape_cast %16 : vector<1x1x16x16xf32> to vector<16x16xf32>
    %c2_24 = arith.constant 2 : index
    %c0_25 = arith.constant 0 : index
    %c0_26 = arith.constant 0 : index
    %18 = vector.load %arg4[%c2_24, %c0_25, %c0_26] : memref<4x16x16xf32, #tpu.memory_space<vmem>>, vector<1x16x16xf32>
    %19 = vector.shape_cast %18 : vector<1x16x16xf32> to vector<16x16xf32>
    %cst_27 = arith.constant dense<0.000000e+00> : vector<16x16xf32>
    %20 = tpu.matmul %19, %17, %cst_27 {dimension_numbers = #tpu.dot_dimension_numbers<[1], [0], [0], [1], [0, 0, 1, 1], [], []>} : vector<16x16xf32>, vector<16x16xf32>, vector<16x16xf32> -> vector<16x16xf32>
    %c2_28 = arith.constant 2 : index
    %c0_29 = arith.constant 0 : index
    %c0_30 = arith.constant 0 : index
    %21 = vector.load %arg5[%c2_28, %c0_29, %c0_30] : memref<4x16x16xf32, #tpu.memory_space<vmem>>, vector<1x16x16xf32>
    %22 = vector.shape_cast %21 : vector<1x16x16xf32> to vector<16x16xf32>
    %cst_31 = arith.constant dense<0.000000e+00> : vector<16x16xf32>
    %23 = tpu.matmul %20, %22, %cst_31 {dimension_numbers = #tpu.dot_dimension_numbers<[1], [0], [0], [1], [0, 0, 1, 1], [], []>} : vector<16x16xf32>, vector<16x16xf32>, vector<16x16xf32> -> vector<16x16xf32>
    %c0_32 = arith.constant 0 : index
    %c3 = arith.constant 3 : index
    %c0_33 = arith.constant 0 : index
    %c0_34 = arith.constant 0 : index
    %24 = vector.load %arg3[%c0_32, %c3, %c0_33, %c0_34] : memref<2x4x16x16xf32, #tpu.memory_space<vmem>>, vector<1x1x16x16xf32>
    %25 = vector.shape_cast %24 : vector<1x1x16x16xf32> to vector<16x16xf32>
    %c3_35 = arith.constant 3 : index
    %c0_36 = arith.constant 0 : index
    %c0_37 = arith.constant 0 : index
    %26 = vector.load %arg4[%c3_35, %c0_36, %c0_37] : memref<4x16x16xf32, #tpu.memory_space<vmem>>, vector<1x16x16xf32>
    %27 = vector.shape_cast %26 : vector<1x16x16xf32> to vector<16x16xf32>
    %cst_38 = arith.constant dense<0.000000e+00> : vector<16x16xf32>
    %28 = tpu.matmul %27, %25, %cst_38 {dimension_numbers = #tpu.dot_dimension_numbers<[1], [0], [0], [1], [0, 0, 1, 1], [], []>} : vector<16x16xf32>, vector<16x16xf32>, vector<16x16xf32> -> vector<16x16xf32>
    %c3_39 = arith.constant 3 : index
    %c0_40 = arith.constant 0 : index
    %c0_41 = arith.constant 0 : index
    %29 = vector.load %arg5[%c3_39, %c0_40, %c0_41] : memref<4x16x16xf32, #tpu.memory_space<vmem>>, vector<1x16x16xf32>
    %30 = vector.shape_cast %29 : vector<1x16x16xf32> to vector<16x16xf32>
    %cst_42 = arith.constant dense<0.000000e+00> : vector<16x16xf32>
    %31 = tpu.matmul %28, %30, %cst_42 {dimension_numbers = #tpu.dot_dimension_numbers<[1], [0], [0], [1], [0, 0, 1, 1], [], []>} : vector<16x16xf32>, vector<16x16xf32>, vector<16x16xf32> -> vector<16x16xf32>
    %c0_43 = arith.constant 0 : index
    %c0_44 = arith.constant 0 : index
    %32 = memref.load %arg6[%c0_43, %c0_44] : memref<4x4xf32, #tpu.memory_space<smem>>
    %33 = vector.broadcast %32 : f32 to vector<16x16xf32>
    %34 = arith.mulf %7, %33 : vector<16x16xf32>
    %c0_45 = arith.constant 0 : index
    %c1_46 = arith.constant 1 : index
    %35 = memref.load %arg6[%c0_45, %c1_46] : memref<4x4xf32, #tpu.memory_space<smem>>
    %36 = vector.broadcast %35 : f32 to vector<16x16xf32>
    %37 = arith.mulf %15, %36 : vector<16x16xf32>
    %38 = arith.addf %34, %37 : vector<16x16xf32>
    %c0_47 = arith.constant 0 : index
    %c2_48 = arith.constant 2 : index
    %39 = memref.load %arg6[%c0_47, %c2_48] : memref<4x4xf32, #tpu.memory_space<smem>>
    %40 = vector.broadcast %39 : f32 to vector<16x16xf32>
    %41 = arith.mulf %23, %40 : vector<16x16xf32>
    %42 = arith.addf %38, %41 : vector<16x16xf32>
    %c0_49 = arith.constant 0 : index
    %c3_50 = arith.constant 3 : index
    %43 = memref.load %arg6[%c0_49, %c3_50] : memref<4x4xf32, #tpu.memory_space<smem>>
    %44 = vector.broadcast %43 : f32 to vector<16x16xf32>
    %45 = arith.mulf %31, %44 : vector<16x16xf32>
    %46 = arith.addf %42, %45 : vector<16x16xf32>
    %c0_51 = arith.constant 0 : index
    %47 = memref.load %arg7[%c0_51] : memref<4xf32, #tpu.memory_space<smem>>
    %48 = vector.broadcast %47 : f32 to vector<16x16xf32>
    %49 = arith.addf %46, %48 : vector<16x16xf32>
    %cst_52 = arith.constant 0.000000e+00 : f32
    %50 = vector.broadcast %cst_52 : f32 to vector<16x16xf32>
    %51 = arith.maximumf %49, %50 : vector<16x16xf32>
    %c1_53 = arith.constant 1 : index
    %c0_54 = arith.constant 0 : index
    %52 = memref.load %arg6[%c1_53, %c0_54] : memref<4x4xf32, #tpu.memory_space<smem>>
    %53 = vector.broadcast %52 : f32 to vector<16x16xf32>
    %54 = arith.mulf %7, %53 : vector<16x16xf32>
    %c1_55 = arith.constant 1 : index
    %c1_56 = arith.constant 1 : index
    %55 = memref.load %arg6[%c1_55, %c1_56] : memref<4x4xf32, #tpu.memory_space<smem>>
    %56 = vector.broadcast %55 : f32 to vector<16x16xf32>
    %57 = arith.mulf %15, %56 : vector<16x16xf32>
    %58 = arith.addf %54, %57 : vector<16x16xf32>
    %c1_57 = arith.constant 1 : index
    %c2_58 = arith.constant 2 : index
    %59 = memref.load %arg6[%c1_57, %c2_58] : memref<4x4xf32, #tpu.memory_space<smem>>
    %60 = vector.broadcast %59 : f32 to vector<16x16xf32>
    %61 = arith.mulf %23, %60 : vector<16x16xf32>
    %62 = arith.addf %58, %61 : vector<16x16xf32>
    %c1_59 = arith.constant 1 : index
    %c3_60 = arith.constant 3 : index
    %63 = memref.load %arg6[%c1_59, %c3_60] : memref<4x4xf32, #tpu.memory_space<smem>>
    %64 = vector.broadcast %63 : f32 to vector<16x16xf32>
    %65 = arith.mulf %31, %64 : vector<16x16xf32>
    %66 = arith.addf %62, %65 : vector<16x16xf32>
    %c1_61 = arith.constant 1 : index
    %67 = memref.load %arg7[%c1_61] : memref<4xf32, #tpu.memory_space<smem>>
    %68 = vector.broadcast %67 : f32 to vector<16x16xf32>
    %69 = arith.addf %66, %68 : vector<16x16xf32>
    %cst_62 = arith.constant 0.000000e+00 : f32
    %70 = vector.broadcast %cst_62 : f32 to vector<16x16xf32>
    %71 = arith.maximumf %69, %70 : vector<16x16xf32>
    %c2_63 = arith.constant 2 : index
    %c0_64 = arith.constant 0 : index
    %72 = memref.load %arg6[%c2_63, %c0_64] : memref<4x4xf32, #tpu.memory_space<smem>>
    %73 = vector.broadcast %72 : f32 to vector<16x16xf32>
    %74 = arith.mulf %7, %73 : vector<16x16xf32>
    %c2_65 = arith.constant 2 : index
    %c1_66 = arith.constant 1 : index
    %75 = memref.load %arg6[%c2_65, %c1_66] : memref<4x4xf32, #tpu.memory_space<smem>>
    %76 = vector.broadcast %75 : f32 to vector<16x16xf32>
    %77 = arith.mulf %15, %76 : vector<16x16xf32>
    %78 = arith.addf %74, %77 : vector<16x16xf32>
    %c2_67 = arith.constant 2 : index
    %c2_68 = arith.constant 2 : index
    %79 = memref.load %arg6[%c2_67, %c2_68] : memref<4x4xf32, #tpu.memory_space<smem>>
    %80 = vector.broadcast %79 : f32 to vector<16x16xf32>
    %81 = arith.mulf %23, %80 : vector<16x16xf32>
    %82 = arith.addf %78, %81 : vector<16x16xf32>
    %c2_69 = arith.constant 2 : index
    %c3_70 = arith.constant 3 : index
    %83 = memref.load %arg6[%c2_69, %c3_70] : memref<4x4xf32, #tpu.memory_space<smem>>
    %84 = vector.broadcast %83 : f32 to vector<16x16xf32>
    %85 = arith.mulf %31, %84 : vector<16x16xf32>
    %86 = arith.addf %82, %85 : vector<16x16xf32>
    %c2_71 = arith.constant 2 : index
    %87 = memref.load %arg7[%c2_71] : memref<4xf32, #tpu.memory_space<smem>>
    %88 = vector.broadcast %87 : f32 to vector<16x16xf32>
    %89 = arith.addf %86, %88 : vector<16x16xf32>
    %cst_72 = arith.constant 0.000000e+00 : f32
    %90 = vector.broadcast %cst_72 : f32 to vector<16x16xf32>
    %91 = arith.maximumf %89, %90 : vector<16x16xf32>
    %c3_73 = arith.constant 3 : index
    %c0_74 = arith.constant 0 : index
    %92 = memref.load %arg6[%c3_73, %c0_74] : memref<4x4xf32, #tpu.memory_space<smem>>
    %93 = vector.broadcast %92 : f32 to vector<16x16xf32>
    %94 = arith.mulf %7, %93 : vector<16x16xf32>
    %c3_75 = arith.constant 3 : index
    %c1_76 = arith.constant 1 : index
    %95 = memref.load %arg6[%c3_75, %c1_76] : memref<4x4xf32, #tpu.memory_space<smem>>
    %96 = vector.broadcast %95 : f32 to vector<16x16xf32>
    %97 = arith.mulf %15, %96 : vector<16x16xf32>
    %98 = arith.addf %94, %97 : vector<16x16xf32>
    %c3_77 = arith.constant 3 : index
    %c2_78 = arith.constant 2 : index
    %99 = memref.load %arg6[%c3_77, %c2_78] : memref<4x4xf32, #tpu.memory_space<smem>>
    %100 = vector.broadcast %99 : f32 to vector<16x16xf32>
    %101 = arith.mulf %23, %100 : vector<16x16xf32>
    %102 = arith.addf %98, %101 : vector<16x16xf32>
    %c3_79 = arith.constant 3 : index
    %c3_80 = arith.constant 3 : index
    %103 = memref.load %arg6[%c3_79, %c3_80] : memref<4x4xf32, #tpu.memory_space<smem>>
    %104 = vector.broadcast %103 : f32 to vector<16x16xf32>
    %105 = arith.mulf %31, %104 : vector<16x16xf32>
    %106 = arith.addf %102, %105 : vector<16x16xf32>
    %c3_81 = arith.constant 3 : index
    %107 = memref.load %arg7[%c3_81] : memref<4xf32, #tpu.memory_space<smem>>
    %108 = vector.broadcast %107 : f32 to vector<16x16xf32>
    %109 = arith.addf %106, %108 : vector<16x16xf32>
    %cst_82 = arith.constant 0.000000e+00 : f32
    %110 = vector.broadcast %cst_82 : f32 to vector<16x16xf32>
    %111 = arith.maximumf %109, %110 : vector<16x16xf32>
    %c0_83 = arith.constant 0 : index
    %c0_84 = arith.constant 0 : index
    %112 = memref.load %arg8[%c0_83, %c0_84] : memref<4x4xf32, #tpu.memory_space<smem>>
    %113 = vector.broadcast %112 : f32 to vector<16x16xf32>
    %114 = arith.mulf %51, %113 : vector<16x16xf32>
    %c0_85 = arith.constant 0 : index
    %c1_86 = arith.constant 1 : index
    %115 = memref.load %arg8[%c0_85, %c1_86] : memref<4x4xf32, #tpu.memory_space<smem>>
    %116 = vector.broadcast %115 : f32 to vector<16x16xf32>
    %117 = arith.mulf %71, %116 : vector<16x16xf32>
    %118 = arith.addf %114, %117 : vector<16x16xf32>
    %c0_87 = arith.constant 0 : index
    %c2_88 = arith.constant 2 : index
    %119 = memref.load %arg8[%c0_87, %c2_88] : memref<4x4xf32, #tpu.memory_space<smem>>
    %120 = vector.broadcast %119 : f32 to vector<16x16xf32>
    %121 = arith.mulf %91, %120 : vector<16x16xf32>
    %122 = arith.addf %118, %121 : vector<16x16xf32>
    %c0_89 = arith.constant 0 : index
    %c3_90 = arith.constant 3 : index
    %123 = memref.load %arg8[%c0_89, %c3_90] : memref<4x4xf32, #tpu.memory_space<smem>>
    %124 = vector.broadcast %123 : f32 to vector<16x16xf32>
    %125 = arith.mulf %111, %124 : vector<16x16xf32>
    %126 = arith.addf %122, %125 : vector<16x16xf32>
    %c0_91 = arith.constant 0 : index
    %127 = memref.load %arg9[%c0_91] : memref<4xf32, #tpu.memory_space<smem>>
    %128 = vector.broadcast %127 : f32 to vector<16x16xf32>
    %129 = arith.addf %126, %128 : vector<16x16xf32>
    %cst_92 = arith.constant 0.000000e+00 : f32
    %130 = vector.broadcast %cst_92 : f32 to vector<16x16xf32>
    %131 = arith.subf %130, %129 : vector<16x16xf32>
    %132 = math.exp %131 : vector<16x16xf32>
    %cst_93 = arith.constant 1.000000e+00 : f32
    %133 = vector.broadcast %cst_93 : f32 to vector<16x16xf32>
    %134 = arith.addf %133, %132 : vector<16x16xf32>
    %135 = tpu.reciprocal %134 {approx = true} : vector<16x16xf32> -> vector<16x16xf32>
    %136 = arith.mulf %7, %135 : vector<16x16xf32>
    %c0_94 = arith.constant 0 : index
    %c0_95 = arith.constant 0 : index
    %c0_96 = arith.constant 0 : index
    %c0_97 = arith.constant 0 : index
    %137 = vector.load %arg10[%c0_94, %c0_95, %c0_96, %c0_97] : memref<2x4x16x16xf32, #tpu.memory_space<vmem>>, vector<1x1x16x16xf32>
    %138 = vector.shape_cast %137 : vector<1x1x16x16xf32> to vector<16x16xf32>
    %139 = vector.shape_cast %136 : vector<16x16xf32> to vector<1x1x16x16xf32>
    tpu.vector_store %arg10[%c0_94, %c0_95, %c0_96, %c0_97], %139 {strides = array<i32>} : memref<2x4x16x16xf32, #tpu.memory_space<vmem>>, vector<1x1x16x16xf32>,
    %c1_98 = arith.constant 1 : index
    %c0_99 = arith.constant 0 : index
    %140 = memref.load %arg8[%c1_98, %c0_99] : memref<4x4xf32, #tpu.memory_space<smem>>
    %141 = vector.broadcast %140 : f32 to vector<16x16xf32>
    %142 = arith.mulf %51, %141 : vector<16x16xf32>
    %c1_100 = arith.constant 1 : index
    %c1_101 = arith.constant 1 : index
    %143 = memref.load %arg8[%c1_100, %c1_101] : memref<4x4xf32, #tpu.memory_space<smem>>
    %144 = vector.broadcast %143 : f32 to vector<16x16xf32>
    %145 = arith.mulf %71, %144 : vector<16x16xf32>
    %146 = arith.addf %142, %145 : vector<16x16xf32>
    %c1_102 = arith.constant 1 : index
    %c2_103 = arith.constant 2 : index
    %147 = memref.load %arg8[%c1_102, %c2_103] : memref<4x4xf32, #tpu.memory_space<smem>>
    %148 = vector.broadcast %147 : f32 to vector<16x16xf32>
    %149 = arith.mulf %91, %148 : vector<16x16xf32>
    %150 = arith.addf %146, %149 : vector<16x16xf32>
    %c1_104 = arith.constant 1 : index
    %c3_105 = arith.constant 3 : index
    %151 = memref.load %arg8[%c1_104, %c3_105] : memref<4x4xf32, #tpu.memory_space<smem>>
    %152 = vector.broadcast %151 : f32 to vector<16x16xf32>
    %153 = arith.mulf %111, %152 : vector<16x16xf32>
    %154 = arith.addf %150, %153 : vector<16x16xf32>
    %c1_106 = arith.constant 1 : index
    %155 = memref.load %arg9[%c1_106] : memref<4xf32, #tpu.memory_space<smem>>
    %156 = vector.broadcast %155 : f32 to vector<16x16xf32>
    %157 = arith.addf %154, %156 : vector<16x16xf32>
    %cst_107 = arith.constant 0.000000e+00 : f32
    %158 = vector.broadcast %cst_107 : f32 to vector<16x16xf32>
    %159 = arith.subf %158, %157 : vector<16x16xf32>
    %160 = math.exp %159 : vector<16x16xf32>
    %cst_108 = arith.constant 1.000000e+00 : f32
    %161 = vector.broadcast %cst_108 : f32 to vector<16x16xf32>
    %162 = arith.addf %161, %160 : vector<16x16xf32>
    %163 = tpu.reciprocal %162 {approx = true} : vector<16x16xf32> -> vector<16x16xf32>
    %164 = arith.mulf %15, %163 : vector<16x16xf32>
    %c0_109 = arith.constant 0 : index
    %c1_110 = arith.constant 1 : index
    %c0_111 = arith.constant 0 : index
    %c0_112 = arith.constant 0 : index
    %165 = vector.load %arg10[%c0_109, %c1_110, %c0_111, %c0_112] : memref<2x4x16x16xf32, #tpu.memory_space<vmem>>, vector<1x1x16x16xf32>
    %166 = vector.shape_cast %165 : vector<1x1x16x16xf32> to vector<16x16xf32>
    %167 = vector.shape_cast %164 : vector<16x16xf32> to vector<1x1x16x16xf32>
    tpu.vector_store %arg10[%c0_109, %c1_110, %c0_111, %c0_112], %167 {strides = array<i32>} : memref<2x4x16x16xf32, #tpu.memory_space<vmem>>, vector<1x1x16x16xf32>,
    %c2_113 = arith.constant 2 : index
    %c0_114 = arith.constant 0 : index
    %168 = memref.load %arg8[%c2_113, %c0_114] : memref<4x4xf32, #tpu.memory_space<smem>>
    %169 = vector.broadcast %168 : f32 to vector<16x16xf32>
    %170 = arith.mulf %51, %169 : vector<16x16xf32>
    %c2_115 = arith.constant 2 : index
    %c1_116 = arith.constant 1 : index
    %171 = memref.load %arg8[%c2_115, %c1_116] : memref<4x4xf32, #tpu.memory_space<smem>>
    %172 = vector.broadcast %171 : f32 to vector<16x16xf32>
    %173 = arith.mulf %71, %172 : vector<16x16xf32>
    %174 = arith.addf %170, %173 : vector<16x16xf32>
    %c2_117 = arith.constant 2 : index
    %c2_118 = arith.constant 2 : index
    %175 = memref.load %arg8[%c2_117, %c2_118] : memref<4x4xf32, #tpu.memory_space<smem>>
    %176 = vector.broadcast %175 : f32 to vector<16x16xf32>
    %177 = arith.mulf %91, %176 : vector<16x16xf32>
    %178 = arith.addf %174, %177 : vector<16x16xf32>
    %c2_119 = arith.constant 2 : index
    %c3_120 = arith.constant 3 : index
    %179 = memref.load %arg8[%c2_119, %c3_120] : memref<4x4xf32, #tpu.memory_space<smem>>
    %180 = vector.broadcast %179 : f32 to vector<16x16xf32>
    %181 = arith.mulf %111, %180 : vector<16x16xf32>
    %182 = arith.addf %178, %181 : vector<16x16xf32>
    %c2_121 = arith.constant 2 : index
    %183 = memref.load %arg9[%c2_121] : memref<4xf32, #tpu.memory_space<smem>>
    %184 = vector.broadcast %183 : f32 to vector<16x16xf32>
    %185 = arith.addf %182, %184 : vector<16x16xf32>
    %cst_122 = arith.constant 0.000000e+00 : f32
    %186 = vector.broadcast %cst_122 : f32 to vector<16x16xf32>
    %187 = arith.subf %186, %185 : vector<16x16xf32>
    %188 = math.exp %187 : vector<16x16xf32>
    %cst_123 = arith.constant 1.000000e+00 : f32
    %189 = vector.broadcast %cst_123 : f32 to vector<16x16xf32>
    %190 = arith.addf %189, %188 : vector<16x16xf32>
    %191 = tpu.reciprocal %190 {approx = true} : vector<16x16xf32> -> vector<16x16xf32>
    %192 = arith.mulf %23, %191 : vector<16x16xf32>
    %c0_124 = arith.constant 0 : index
    %c2_125 = arith.constant 2 : index
    %c0_126 = arith.constant 0 : index
    %c0_127 = arith.constant 0 : index
    %193 = vector.load %arg10[%c0_124, %c2_125, %c0_126, %c0_127] : memref<2x4x16x16xf32, #tpu.memory_space<vmem>>, vector<1x1x16x16xf32>
    %194 = vector.shape_cast %193 : vector<1x1x16x16xf32> to vector<16x16xf32>
    %195 = vector.shape_cast %192 : vector<16x16xf32> to vector<1x1x16x16xf32>
    tpu.vector_store %arg10[%c0_124, %c2_125, %c0_126, %c0_127], %195 {strides = array<i32>} : memref<2x4x16x16xf32, #tpu.memory_space<vmem>>, vector<1x1x16x16xf32>,
    %c3_128 = arith.constant 3 : index
    %c0_129 = arith.constant 0 : index
    %196 = memref.load %arg8[%c3_128, %c0_129] : memref<4x4xf32, #tpu.memory_space<smem>>
    %197 = vector.broadcast %196 : f32 to vector<16x16xf32>
    %198 = arith.mulf %51, %197 : vector<16x16xf32>
    %c3_130 = arith.constant 3 : index
    %c1_131 = arith.constant 1 : index
    %199 = memref.load %arg8[%c3_130, %c1_131] : memref<4x4xf32, #tpu.memory_space<smem>>
    %200 = vector.broadcast %199 : f32 to vector<16x16xf32>
    %201 = arith.mulf %71, %200 : vector<16x16xf32>
    %202 = arith.addf %198, %201 : vector<16x16xf32>
    %c3_132 = arith.constant 3 : index
    %c2_133 = arith.constant 2 : index
    %203 = memref.load %arg8[%c3_132, %c2_133] : memref<4x4xf32, #tpu.memory_space<smem>>
    %204 = vector.broadcast %203 : f32 to vector<16x16xf32>
    %205 = arith.mulf %91, %204 : vector<16x16xf32>
    %206 = arith.addf %202, %205 : vector<16x16xf32>
    %c3_134 = arith.constant 3 : index
    %c3_135 = arith.constant 3 : index
    %207 = memref.load %arg8[%c3_134, %c3_135] : memref<4x4xf32, #tpu.memory_space<smem>>
    %208 = vector.broadcast %207 : f32 to vector<16x16xf32>
    %209 = arith.mulf %111, %208 : vector<16x16xf32>
    %210 = arith.addf %206, %209 : vector<16x16xf32>
    %c3_136 = arith.constant 3 : index
    %211 = memref.load %arg9[%c3_136] : memref<4xf32, #tpu.memory_space<smem>>
    %212 = vector.broadcast %211 : f32 to vector<16x16xf32>
    %213 = arith.addf %210, %212 : vector<16x16xf32>
    %cst_137 = arith.constant 0.000000e+00 : f32
    %214 = vector.broadcast %cst_137 : f32 to vector<16x16xf32>
    %215 = arith.subf %214, %213 : vector<16x16xf32>
    %216 = math.exp %215 : vector<16x16xf32>
    %cst_138 = arith.constant 1.000000e+00 : f32
    %217 = vector.broadcast %cst_138 : f32 to vector<16x16xf32>
    %218 = arith.addf %217, %216 : vector<16x16xf32>
    %219 = tpu.reciprocal %218 {approx = true} : vector<16x16xf32> -> vector<16x16xf32>
    %220 = arith.mulf %31, %219 : vector<16x16xf32>
    %c0_139 = arith.constant 0 : index
    %c3_140 = arith.constant 3 : index
    %c0_141 = arith.constant 0 : index
    %c0_142 = arith.constant 0 : index
    %221 = vector.load %arg10[%c0_139, %c3_140, %c0_141, %c0_142] : memref<2x4x16x16xf32, #tpu.memory_space<vmem>>, vector<1x1x16x16xf32>
    %222 = vector.shape_cast %221 : vector<1x1x16x16xf32> to vector<16x16xf32>
    %223 = vector.shape_cast %220 : vector<16x16xf32> to vector<1x1x16x16xf32>
    tpu.vector_store %arg10[%c0_139, %c3_140, %c0_141, %c0_142], %223 {strides = array<i32>} : memref<2x4x16x16xf32, #tpu.memory_space<vmem>>, vector<1x1x16x16xf32>,
    %c1_143 = arith.constant 1 : index
    %c0_144 = arith.constant 0 : index
    %c0_145 = arith.constant 0 : index
    %c0_146 = arith.constant 0 : index
    %224 = vector.load %arg3[%c1_143, %c0_144, %c0_145, %c0_146] : memref<2x4x16x16xf32, #tpu.memory_space<vmem>>, vector<1x1x16x16xf32>
    %225 = vector.shape_cast %224 : vector<1x1x16x16xf32> to vector<16x16xf32>
    %c0_147 = arith.constant 0 : index
    %c0_148 = arith.constant 0 : index
    %c0_149 = arith.constant 0 : index
    %226 = vector.load %arg4[%c0_147, %c0_148, %c0_149] : memref<4x16x16xf32, #tpu.memory_space<vmem>>, vector<1x16x16xf32>
    %227 = vector.shape_cast %226 : vector<1x16x16xf32> to vector<16x16xf32>
    %cst_150 = arith.constant dense<0.000000e+00> : vector<16x16xf32>
    %228 = tpu.matmul %227, %225, %cst_150 {dimension_numbers = #tpu.dot_dimension_numbers<[1], [0], [0], [1], [0, 0, 1, 1], [], []>} : vector<16x16xf32>, vector<16x16xf32>, vector<16x16xf32> -> vector<16x16xf32>
    %c0_151 = arith.constant 0 : index
    %c0_152 = arith.constant 0 : index
    %c0_153 = arith.constant 0 : index
    %229 = vector.load %arg5[%c0_151, %c0_152, %c0_153] : memref<4x16x16xf32, #tpu.memory_space<vmem>>, vector<1x16x16xf32>
    %230 = vector.shape_cast %229 : vector<1x16x16xf32> to vector<16x16xf32>
    %cst_154 = arith.constant dense<0.000000e+00> : vector<16x16xf32>
    %231 = tpu.matmul %228, %230, %cst_154 {dimension_numbers = #tpu.dot_dimension_numbers<[1], [0], [0], [1], [0, 0, 1, 1], [], []>} : vector<16x16xf32>, vector<16x16xf32>, vector<16x16xf32> -> vector<16x16xf32>
    %c1_155 = arith.constant 1 : index
    %c1_156 = arith.constant 1 : index
    %c0_157 = arith.constant 0 : index
    %c0_158 = arith.constant 0 : index
    %232 = vector.load %arg3[%c1_155, %c1_156, %c0_157, %c0_158] : memref<2x4x16x16xf32, #tpu.memory_space<vmem>>, vector<1x1x16x16xf32>
    %233 = vector.shape_cast %232 : vector<1x1x16x16xf32> to vector<16x16xf32>
    %c1_159 = arith.constant 1 : index
    %c0_160 = arith.constant 0 : index
    %c0_161 = arith.constant 0 : index
    %234 = vector.load %arg4[%c1_159, %c0_160, %c0_161] : memref<4x16x16xf32, #tpu.memory_space<vmem>>, vector<1x16x16xf32>
    %235 = vector.shape_cast %234 : vector<1x16x16xf32> to vector<16x16xf32>
    %cst_162 = arith.constant dense<0.000000e+00> : vector<16x16xf32>
    %236 = tpu.matmul %235, %233, %cst_162 {dimension_numbers = #tpu.dot_dimension_numbers<[1], [0], [0], [1], [0, 0, 1, 1], [], []>} : vector<16x16xf32>, vector<16x16xf32>, vector<16x16xf32> -> vector<16x16xf32>
    %c1_163 = arith.constant 1 : index
    %c0_164 = arith.constant 0 : index
    %c0_165 = arith.constant 0 : index
    %237 = vector.load %arg5[%c1_163, %c0_164, %c0_165] : memref<4x16x16xf32, #tpu.memory_space<vmem>>, vector<1x16x16xf32>
    %238 = vector.shape_cast %237 : vector<1x16x16xf32> to vector<16x16xf32>
    %cst_166 = arith.constant dense<0.000000e+00> : vector<16x16xf32>
    %239 = tpu.matmul %236, %238, %cst_166 {dimension_numbers = #tpu.dot_dimension_numbers<[1], [0], [0], [1], [0, 0, 1, 1], [], []>} : vector<16x16xf32>, vector<16x16xf32>, vector<16x16xf32> -> vector<16x16xf32>
    %c1_167 = arith.constant 1 : index
    %c2_168 = arith.constant 2 : index
    %c0_169 = arith.constant 0 : index
    %c0_170 = arith.constant 0 : index
    %240 = vector.load %arg3[%c1_167, %c2_168, %c0_169, %c0_170] : memref<2x4x16x16xf32, #tpu.memory_space<vmem>>, vector<1x1x16x16xf32>
    %241 = vector.shape_cast %240 : vector<1x1x16x16xf32> to vector<16x16xf32>
    %c2_171 = arith.constant 2 : index
    %c0_172 = arith.constant 0 : index
    %c0_173 = arith.constant 0 : index
    %242 = vector.load %arg4[%c2_171, %c0_172, %c0_173] : memref<4x16x16xf32, #tpu.memory_space<vmem>>, vector<1x16x16xf32>
    %243 = vector.shape_cast %242 : vector<1x16x16xf32> to vector<16x16xf32>
    %cst_174 = arith.constant dense<0.000000e+00> : vector<16x16xf32>
    %244 = tpu.matmul %243, %241, %cst_174 {dimension_numbers = #tpu.dot_dimension_numbers<[1], [0], [0], [1], [0, 0, 1, 1], [], []>} : vector<16x16xf32>, vector<16x16xf32>, vector<16x16xf32> -> vector<16x16xf32>
    %c2_175 = arith.constant 2 : index
    %c0_176 = arith.constant 0 : index
    %c0_177 = arith.constant 0 : index
    %245 = vector.load %arg5[%c2_175, %c0_176, %c0_177] : memref<4x16x16xf32, #tpu.memory_space<vmem>>, vector<1x16x16xf32>
    %246 = vector.shape_cast %245 : vector<1x16x16xf32> to vector<16x16xf32>
    %cst_178 = arith.constant dense<0.000000e+00> : vector<16x16xf32>
    %247 = tpu.matmul %244, %246, %cst_178 {dimension_numbers = #tpu.dot_dimension_numbers<[1], [0], [0], [1], [0, 0, 1, 1], [], []>} : vector<16x16xf32>, vector<16x16xf32>, vector<16x16xf32> -> vector<16x16xf32>
    %c1_179 = arith.constant 1 : index
    %c3_180 = arith.constant 3 : index
    %c0_181 = arith.constant 0 : index
    %c0_182 = arith.constant 0 : index
    %248 = vector.load %arg3[%c1_179, %c3_180, %c0_181, %c0_182] : memref<2x4x16x16xf32, #tpu.memory_space<vmem>>, vector<1x1x16x16xf32>
    %249 = vector.shape_cast %248 : vector<1x1x16x16xf32> to vector<16x16xf32>
    %c3_183 = arith.constant 3 : index
    %c0_184 = arith.constant 0 : index
    %c0_185 = arith.constant 0 : index
    %250 = vector.load %arg4[%c3_183, %c0_184, %c0_185] : memref<4x16x16xf32, #tpu.memory_space<vmem>>, vector<1x16x16xf32>
    %251 = vector.shape_cast %250 : vector<1x16x16xf32> to vector<16x16xf32>
    %cst_186 = arith.constant dense<0.000000e+00> : vector<16x16xf32>
    %252 = tpu.matmul %251, %249, %cst_186 {dimension_numbers = #tpu.dot_dimension_numbers<[1], [0], [0], [1], [0, 0, 1, 1], [], []>} : vector<16x16xf32>, vector<16x16xf32>, vector<16x16xf32> -> vector<16x16xf32>
    %c3_187 = arith.constant 3 : index
    %c0_188 = arith.constant 0 : index
    %c0_189 = arith.constant 0 : index
    %253 = vector.load %arg5[%c3_187, %c0_188, %c0_189] : memref<4x16x16xf32, #tpu.memory_space<vmem>>, vector<1x16x16xf32>
    %254 = vector.shape_cast %253 : vector<1x16x16xf32> to vector<16x16xf32>
    %cst_190 = arith.constant dense<0.000000e+00> : vector<16x16xf32>
    %255 = tpu.matmul %252, %254, %cst_190 {dimension_numbers = #tpu.dot_dimension_numbers<[1], [0], [0], [1], [0, 0, 1, 1], [], []>} : vector<16x16xf32>, vector<16x16xf32>, vector<16x16xf32> -> vector<16x16xf32>
    %c0_191 = arith.constant 0 : index
    %c0_192 = arith.constant 0 : index
    %256 = memref.load %arg6[%c0_191, %c0_192] : memref<4x4xf32, #tpu.memory_space<smem>>
    %257 = vector.broadcast %256 : f32 to vector<16x16xf32>
    %258 = arith.mulf %231, %257 : vector<16x16xf32>
    %c0_193 = arith.constant 0 : index
    %c1_194 = arith.constant 1 : index
    %259 = memref.load %arg6[%c0_193, %c1_194] : memref<4x4xf32, #tpu.memory_space<smem>>
    %260 = vector.broadcast %259 : f32 to vector<16x16xf32>
    %261 = arith.mulf %239, %260 : vector<16x16xf32>
    %262 = arith.addf %258, %261 : vector<16x16xf32>
    %c0_195 = arith.constant 0 : index
    %c2_196 = arith.constant 2 : index
    %263 = memref.load %arg6[%c0_195, %c2_196] : memref<4x4xf32, #tpu.memory_space<smem>>
    %264 = vector.broadcast %263 : f32 to vector<16x16xf32>
    %265 = arith.mulf %247, %264 : vector<16x16xf32>
    %266 = arith.addf %262, %265 : vector<16x16xf32>
    %c0_197 = arith.constant 0 : index
    %c3_198 = arith.constant 3 : index
    %267 = memref.load %arg6[%c0_197, %c3_198] : memref<4x4xf32, #tpu.memory_space<smem>>
    %268 = vector.broadcast %267 : f32 to vector<16x16xf32>
    %269 = arith.mulf %255, %268 : vector<16x16xf32>
    %270 = arith.addf %266, %269 : vector<16x16xf32>
    %c0_199 = arith.constant 0 : index
    %271 = memref.load %arg7[%c0_199] : memref<4xf32, #tpu.memory_space<smem>>
    %272 = vector.broadcast %271 : f32 to vector<16x16xf32>
    %273 = arith.addf %270, %272 : vector<16x16xf32>
    %cst_200 = arith.constant 0.000000e+00 : f32
    %274 = vector.broadcast %cst_200 : f32 to vector<16x16xf32>
    %275 = arith.maximumf %273, %274 : vector<16x16xf32>
    %c1_201 = arith.constant 1 : index
    %c0_202 = arith.constant 0 : index
    %276 = memref.load %arg6[%c1_201, %c0_202] : memref<4x4xf32, #tpu.memory_space<smem>>
    %277 = vector.broadcast %276 : f32 to vector<16x16xf32>
    %278 = arith.mulf %231, %277 : vector<16x16xf32>
    %c1_203 = arith.constant 1 : index
    %c1_204 = arith.constant 1 : index
    %279 = memref.load %arg6[%c1_203, %c1_204] : memref<4x4xf32, #tpu.memory_space<smem>>
    %280 = vector.broadcast %279 : f32 to vector<16x16xf32>
    %281 = arith.mulf %239, %280 : vector<16x16xf32>
    %282 = arith.addf %278, %281 : vector<16x16xf32>
    %c1_205 = arith.constant 1 : index
    %c2_206 = arith.constant 2 : index
    %283 = memref.load %arg6[%c1_205, %c2_206] : memref<4x4xf32, #tpu.memory_space<smem>>
    %284 = vector.broadcast %283 : f32 to vector<16x16xf32>
    %285 = arith.mulf %247, %284 : vector<16x16xf32>
    %286 = arith.addf %282, %285 : vector<16x16xf32>
    %c1_207 = arith.constant 1 : index
    %c3_208 = arith.constant 3 : index
    %287 = memref.load %arg6[%c1_207, %c3_208] : memref<4x4xf32, #tpu.memory_space<smem>>
    %288 = vector.broadcast %287 : f32 to vector<16x16xf32>
    %289 = arith.mulf %255, %288 : vector<16x16xf32>
    %290 = arith.addf %286, %289 : vector<16x16xf32>
    %c1_209 = arith.constant 1 : index
    %291 = memref.load %arg7[%c1_209] : memref<4xf32, #tpu.memory_space<smem>>
    %292 = vector.broadcast %291 : f32 to vector<16x16xf32>
    %293 = arith.addf %290, %292 : vector<16x16xf32>
    %cst_210 = arith.constant 0.000000e+00 : f32
    %294 = vector.broadcast %cst_210 : f32 to vector<16x16xf32>
    %295 = arith.maximumf %293, %294 : vector<16x16xf32>
    %c2_211 = arith.constant 2 : index
    %c0_212 = arith.constant 0 : index
    %296 = memref.load %arg6[%c2_211, %c0_212] : memref<4x4xf32, #tpu.memory_space<smem>>
    %297 = vector.broadcast %296 : f32 to vector<16x16xf32>
    %298 = arith.mulf %231, %297 : vector<16x16xf32>
    %c2_213 = arith.constant 2 : index
    %c1_214 = arith.constant 1 : index
    %299 = memref.load %arg6[%c2_213, %c1_214] : memref<4x4xf32, #tpu.memory_space<smem>>
    %300 = vector.broadcast %299 : f32 to vector<16x16xf32>
    %301 = arith.mulf %239, %300 : vector<16x16xf32>
    %302 = arith.addf %298, %301 : vector<16x16xf32>
    %c2_215 = arith.constant 2 : index
    %c2_216 = arith.constant 2 : index
    %303 = memref.load %arg6[%c2_215, %c2_216] : memref<4x4xf32, #tpu.memory_space<smem>>
    %304 = vector.broadcast %303 : f32 to vector<16x16xf32>
    %305 = arith.mulf %247, %304 : vector<16x16xf32>
    %306 = arith.addf %302, %305 : vector<16x16xf32>
    %c2_217 = arith.constant 2 : index
    %c3_218 = arith.constant 3 : index
    %307 = memref.load %arg6[%c2_217, %c3_218] : memref<4x4xf32, #tpu.memory_space<smem>>
    %308 = vector.broadcast %307 : f32 to vector<16x16xf32>
    %309 = arith.mulf %255, %308 : vector<16x16xf32>
    %310 = arith.addf %306, %309 : vector<16x16xf32>
    %c2_219 = arith.constant 2 : index
    %311 = memref.load %arg7[%c2_219] : memref<4xf32, #tpu.memory_space<smem>>
    %312 = vector.broadcast %311 : f32 to vector<16x16xf32>
    %313 = arith.addf %310, %312 : vector<16x16xf32>
    %cst_220 = arith.constant 0.000000e+00 : f32
    %314 = vector.broadcast %cst_220 : f32 to vector<16x16xf32>
    %315 = arith.maximumf %313, %314 : vector<16x16xf32>
    %c3_221 = arith.constant 3 : index
    %c0_222 = arith.constant 0 : index
    %316 = memref.load %arg6[%c3_221, %c0_222] : memref<4x4xf32, #tpu.memory_space<smem>>
    %317 = vector.broadcast %316 : f32 to vector<16x16xf32>
    %318 = arith.mulf %231, %317 : vector<16x16xf32>
    %c3_223 = arith.constant 3 : index
    %c1_224 = arith.constant 1 : index
    %319 = memref.load %arg6[%c3_223, %c1_224] : memref<4x4xf32, #tpu.memory_space<smem>>
    %320 = vector.broadcast %319 : f32 to vector<16x16xf32>
    %321 = arith.mulf %239, %320 : vector<16x16xf32>
    %322 = arith.addf %318, %321 : vector<16x16xf32>
    %c3_225 = arith.constant 3 : index
    %c2_226 = arith.constant 2 : index
    %323 = memref.load %arg6[%c3_225, %c2_226] : memref<4x4xf32, #tpu.memory_space<smem>>
    %324 = vector.broadcast %323 : f32 to vector<16x16xf32>
    %325 = arith.mulf %247, %324 : vector<16x16xf32>
    %326 = arith.addf %322, %325 : vector<16x16xf32>
    %c3_227 = arith.constant 3 : index
    %c3_228 = arith.constant 3 : index
    %327 = memref.load %arg6[%c3_227, %c3_228] : memref<4x4xf32, #tpu.memory_space<smem>>
    %328 = vector.broadcast %327 : f32 to vector<16x16xf32>
    %329 = arith.mulf %255, %328 : vector<16x16xf32>
    %330 = arith.addf %326, %329 : vector<16x16xf32>
    %c3_229 = arith.constant 3 : index
    %331 = memref.load %arg7[%c3_229] : memref<4xf32, #tpu.memory_space<smem>>
    %332 = vector.broadcast %331 : f32 to vector<16x16xf32>
    %333 = arith.addf %330, %332 : vector<16x16xf32>
    %cst_230 = arith.constant 0.000000e+00 : f32
    %334 = vector.broadcast %cst_230 : f32 to vector<16x16xf32>
    %335 = arith.maximumf %333, %334 : vector<16x16xf32>
    %c0_231 = arith.constant 0 : index
    %c0_232 = arith.constant 0 : index
    %336 = memref.load %arg8[%c0_231, %c0_232] : memref<4x4xf32, #tpu.memory_space<smem>>
    %337 = vector.broadcast %336 : f32 to vector<16x16xf32>
    %338 = arith.mulf %275, %337 : vector<16x16xf32>
    %c0_233 = arith.constant 0 : index
    %c1_234 = arith.constant 1 : index
    %339 = memref.load %arg8[%c0_233, %c1_234] : memref<4x4xf32, #tpu.memory_space<smem>>
    %340 = vector.broadcast %339 : f32 to vector<16x16xf32>
    %341 = arith.mulf %295, %340 : vector<16x16xf32>
    %342 = arith.addf %338, %341 : vector<16x16xf32>
    %c0_235 = arith.constant 0 : index
    %c2_236 = arith.constant 2 : index
    %343 = memref.load %arg8[%c0_235, %c2_236] : memref<4x4xf32, #tpu.memory_space<smem>>
    %344 = vector.broadcast %343 : f32 to vector<16x16xf32>
    %345 = arith.mulf %315, %344 : vector<16x16xf32>
    %346 = arith.addf %342, %345 : vector<16x16xf32>
    %c0_237 = arith.constant 0 : index
    %c3_238 = arith.constant 3 : index
    %347 = memref.load %arg8[%c0_237, %c3_238] : memref<4x4xf32, #tpu.memory_space<smem>>
    %348 = vector.broadcast %347 : f32 to vector<16x16xf32>
    %349 = arith.mulf %335, %348 : vector<16x16xf32>
    %350 = arith.addf %346, %349 : vector<16x16xf32>
    %c0_239 = arith.constant 0 : index
    %351 = memref.load %arg9[%c0_239] : memref<4xf32, #tpu.memory_space<smem>>
    %352 = vector.broadcast %351 : f32 to vector<16x16xf32>
    %353 = arith.addf %350, %352 : vector<16x16xf32>
    %cst_240 = arith.constant 0.000000e+00 : f32
    %354 = vector.broadcast %cst_240 : f32 to vector<16x16xf32>
    %355 = arith.subf %354, %353 : vector<16x16xf32>
    %356 = math.exp %355 : vector<16x16xf32>
    %cst_241 = arith.constant 1.000000e+00 : f32
    %357 = vector.broadcast %cst_241 : f32 to vector<16x16xf32>
    %358 = arith.addf %357, %356 : vector<16x16xf32>
    %359 = tpu.reciprocal %358 {approx = true} : vector<16x16xf32> -> vector<16x16xf32>
    %360 = arith.mulf %231, %359 : vector<16x16xf32>
    %c1_242 = arith.constant 1 : index
    %c0_243 = arith.constant 0 : index
    %c0_244 = arith.constant 0 : index
    %c0_245 = arith.constant 0 : index
    %361 = vector.load %arg10[%c1_242, %c0_243, %c0_244, %c0_245] : memref<2x4x16x16xf32, #tpu.memory_space<vmem>>, vector<1x1x16x16xf32>
    %362 = vector.shape_cast %361 : vector<1x1x16x16xf32> to vector<16x16xf32>
    %363 = vector.shape_cast %360 : vector<16x16xf32> to vector<1x1x16x16xf32>
    tpu.vector_store %arg10[%c1_242, %c0_243, %c0_244, %c0_245], %363 {strides = array<i32>} : memref<2x4x16x16xf32, #tpu.memory_space<vmem>>, vector<1x1x16x16xf32>,
    %c1_246 = arith.constant 1 : index
    %c0_247 = arith.constant 0 : index
    %364 = memref.load %arg8[%c1_246, %c0_247] : memref<4x4xf32, #tpu.memory_space<smem>>
    %365 = vector.broadcast %364 : f32 to vector<16x16xf32>
    %366 = arith.mulf %275, %365 : vector<16x16xf32>
    %c1_248 = arith.constant 1 : index
    %c1_249 = arith.constant 1 : index
    %367 = memref.load %arg8[%c1_248, %c1_249] : memref<4x4xf32, #tpu.memory_space<smem>>
    %368 = vector.broadcast %367 : f32 to vector<16x16xf32>
    %369 = arith.mulf %295, %368 : vector<16x16xf32>
    %370 = arith.addf %366, %369 : vector<16x16xf32>
    %c1_250 = arith.constant 1 : index
    %c2_251 = arith.constant 2 : index
    %371 = memref.load %arg8[%c1_250, %c2_251] : memref<4x4xf32, #tpu.memory_space<smem>>
    %372 = vector.broadcast %371 : f32 to vector<16x16xf32>
    %373 = arith.mulf %315, %372 : vector<16x16xf32>
    %374 = arith.addf %370, %373 : vector<16x16xf32>
    %c1_252 = arith.constant 1 : index
    %c3_253 = arith.constant 3 : index
    %375 = memref.load %arg8[%c1_252, %c3_253] : memref<4x4xf32, #tpu.memory_space<smem>>
    %376 = vector.broadcast %375 : f32 to vector<16x16xf32>
    %377 = arith.mulf %335, %376 : vector<16x16xf32>
    %378 = arith.addf %374, %377 : vector<16x16xf32>
    %c1_254 = arith.constant 1 : index
    %379 = memref.load %arg9[%c1_254] : memref<4xf32, #tpu.memory_space<smem>>
    %380 = vector.broadcast %379 : f32 to vector<16x16xf32>
    %381 = arith.addf %378, %380 : vector<16x16xf32>
    %cst_255 = arith.constant 0.000000e+00 : f32
    %382 = vector.broadcast %cst_255 : f32 to vector<16x16xf32>
    %383 = arith.subf %382, %381 : vector<16x16xf32>
    %384 = math.exp %383 : vector<16x16xf32>
    %cst_256 = arith.constant 1.000000e+00 : f32
    %385 = vector.broadcast %cst_256 : f32 to vector<16x16xf32>
    %386 = arith.addf %385, %384 : vector<16x16xf32>
    %387 = tpu.reciprocal %386 {approx = true} : vector<16x16xf32> -> vector<16x16xf32>
    %388 = arith.mulf %239, %387 : vector<16x16xf32>
    %c1_257 = arith.constant 1 : index
    %c1_258 = arith.constant 1 : index
    %c0_259 = arith.constant 0 : index
    %c0_260 = arith.constant 0 : index
    %389 = vector.load %arg10[%c1_257, %c1_258, %c0_259, %c0_260] : memref<2x4x16x16xf32, #tpu.memory_space<vmem>>, vector<1x1x16x16xf32>
    %390 = vector.shape_cast %389 : vector<1x1x16x16xf32> to vector<16x16xf32>
    %391 = vector.shape_cast %388 : vector<16x16xf32> to vector<1x1x16x16xf32>
    tpu.vector_store %arg10[%c1_257, %c1_258, %c0_259, %c0_260], %391 {strides = array<i32>} : memref<2x4x16x16xf32, #tpu.memory_space<vmem>>, vector<1x1x16x16xf32>,
    %c2_261 = arith.constant 2 : index
    %c0_262 = arith.constant 0 : index
    %392 = memref.load %arg8[%c2_261, %c0_262] : memref<4x4xf32, #tpu.memory_space<smem>>
    %393 = vector.broadcast %392 : f32 to vector<16x16xf32>
    %394 = arith.mulf %275, %393 : vector<16x16xf32>
    %c2_263 = arith.constant 2 : index
    %c1_264 = arith.constant 1 : index
    %395 = memref.load %arg8[%c2_263, %c1_264] : memref<4x4xf32, #tpu.memory_space<smem>>
    %396 = vector.broadcast %395 : f32 to vector<16x16xf32>
    %397 = arith.mulf %295, %396 : vector<16x16xf32>
    %398 = arith.addf %394, %397 : vector<16x16xf32>
    %c2_265 = arith.constant 2 : index
    %c2_266 = arith.constant 2 : index
    %399 = memref.load %arg8[%c2_265, %c2_266] : memref<4x4xf32, #tpu.memory_space<smem>>
    %400 = vector.broadcast %399 : f32 to vector<16x16xf32>
    %401 = arith.mulf %315, %400 : vector<16x16xf32>
    %402 = arith.addf %398, %401 : vector<16x16xf32>
    %c2_267 = arith.constant 2 : index
    %c3_268 = arith.constant 3 : index
    %403 = memref.load %arg8[%c2_267, %c3_268] : memref<4x4xf32, #tpu.memory_space<smem>>
    %404 = vector.broadcast %403 : f32 to vector<16x16xf32>
    %405 = arith.mulf %335, %404 : vector<16x16xf32>
    %406 = arith.addf %402, %405 : vector<16x16xf32>
    %c2_269 = arith.constant 2 : index
    %407 = memref.load %arg9[%c2_269] : memref<4xf32, #tpu.memory_space<smem>>
    %408 = vector.broadcast %407 : f32 to vector<16x16xf32>
    %409 = arith.addf %406, %408 : vector<16x16xf32>
    %cst_270 = arith.constant 0.000000e+00 : f32
    %410 = vector.broadcast %cst_270 : f32 to vector<16x16xf32>
    %411 = arith.subf %410, %409 : vector<16x16xf32>
    %412 = math.exp %411 : vector<16x16xf32>
    %cst_271 = arith.constant 1.000000e+00 : f32
    %413 = vector.broadcast %cst_271 : f32 to vector<16x16xf32>
    %414 = arith.addf %413, %412 : vector<16x16xf32>
    %415 = tpu.reciprocal %414 {approx = true} : vector<16x16xf32> -> vector<16x16xf32>
    %416 = arith.mulf %247, %415 : vector<16x16xf32>
    %c1_272 = arith.constant 1 : index
    %c2_273 = arith.constant 2 : index
    %c0_274 = arith.constant 0 : index
    %c0_275 = arith.constant 0 : index
    %417 = vector.load %arg10[%c1_272, %c2_273, %c0_274, %c0_275] : memref<2x4x16x16xf32, #tpu.memory_space<vmem>>, vector<1x1x16x16xf32>
    %418 = vector.shape_cast %417 : vector<1x1x16x16xf32> to vector<16x16xf32>
    %419 = vector.shape_cast %416 : vector<16x16xf32> to vector<1x1x16x16xf32>
    tpu.vector_store %arg10[%c1_272, %c2_273, %c0_274, %c0_275], %419 {strides = array<i32>} : memref<2x4x16x16xf32, #tpu.memory_space<vmem>>, vector<1x1x16x16xf32>,
    %c3_276 = arith.constant 3 : index
    %c0_277 = arith.constant 0 : index
    %420 = memref.load %arg8[%c3_276, %c0_277] : memref<4x4xf32, #tpu.memory_space<smem>>
    %421 = vector.broadcast %420 : f32 to vector<16x16xf32>
    %422 = arith.mulf %275, %421 : vector<16x16xf32>
    %c3_278 = arith.constant 3 : index
    %c1_279 = arith.constant 1 : index
    %423 = memref.load %arg8[%c3_278, %c1_279] : memref<4x4xf32, #tpu.memory_space<smem>>
    %424 = vector.broadcast %423 : f32 to vector<16x16xf32>
    %425 = arith.mulf %295, %424 : vector<16x16xf32>
    %426 = arith.addf %422, %425 : vector<16x16xf32>
    %c3_280 = arith.constant 3 : index
    %c2_281 = arith.constant 2 : index
    %427 = memref.load %arg8[%c3_280, %c2_281] : memref<4x4xf32, #tpu.memory_space<smem>>
    %428 = vector.broadcast %427 : f32 to vector<16x16xf32>
    %429 = arith.mulf %315, %428 : vector<16x16xf32>
    %430 = arith.addf %426, %429 : vector<16x16xf32>
    %c3_282 = arith.constant 3 : index
    %c3_283 = arith.constant 3 : index
    %431 = memref.load %arg8[%c3_282, %c3_283] : memref<4x4xf32, #tpu.memory_space<smem>>
    %432 = vector.broadcast %431 : f32 to vector<16x16xf32>
    %433 = arith.mulf %335, %432 : vector<16x16xf32>
    %434 = arith.addf %430, %433 : vector<16x16xf32>
    %c3_284 = arith.constant 3 : index
    %435 = memref.load %arg9[%c3_284] : memref<4xf32, #tpu.memory_space<smem>>
    %436 = vector.broadcast %435 : f32 to vector<16x16xf32>
    %437 = arith.addf %434, %436 : vector<16x16xf32>
    %cst_285 = arith.constant 0.000000e+00 : f32
    %438 = vector.broadcast %cst_285 : f32 to vector<16x16xf32>
    %439 = arith.subf %438, %437 : vector<16x16xf32>
    %440 = math.exp %439 : vector<16x16xf32>
    %cst_286 = arith.constant 1.000000e+00 : f32
    %441 = vector.broadcast %cst_286 : f32 to vector<16x16xf32>
    %442 = arith.addf %441, %440 : vector<16x16xf32>
    %443 = tpu.reciprocal %442 {approx = true} : vector<16x16xf32> -> vector<16x16xf32>
    %444 = arith.mulf %255, %443 : vector<16x16xf32>
    %c1_287 = arith.constant 1 : index
    %c3_288 = arith.constant 3 : index
    %c0_289 = arith.constant 0 : index
    %c0_290 = arith.constant 0 : index
    %445 = vector.load %arg10[%c1_287, %c3_288, %c0_289, %c0_290] : memref<2x4x16x16xf32, #tpu.memory_space<vmem>>, vector<1x1x16x16xf32>
    %446 = vector.shape_cast %445 : vector<1x1x16x16xf32> to vector<16x16xf32>
    %447 = vector.shape_cast %444 : vector<16x16xf32> to vector<1x1x16x16xf32>
    tpu.vector_store %arg10[%c1_287, %c3_288, %c0_289, %c0_290], %447 {strides = array<i32>} : memref<2x4x16x16xf32, #tpu.memory_space<vmem>>, vector<1x1x16x16xf32>,
    return
  }
  func.func @transform_0(%arg0: i32, %arg1: i32, %arg2: i32) -> (i32, i32, i32, i32) {
    %c0_i32 = arith.constant 0 : i32
    %c0_i32_0 = arith.constant 0 : i32
    return %arg0, %c0_i32, %arg1, %arg2 : i32, i32, i32, i32
  }
  func.func @transform_1(%arg0: i32, %arg1: i32, %arg2: i32) -> (i32, i32, i32) {
    %c0_i32 = arith.constant 0 : i32
    %c0_i32_0 = arith.constant 0 : i32
    %c0_i32_1 = arith.constant 0 : i32
    %c0_i32_2 = arith.constant 0 : i32
    return %c0_i32, %c0_i32_0, %c0_i32_1 : i32, i32, i32
  }
  func.func @transform_2(%arg0: i32, %arg1: i32, %arg2: i32) -> (i32, i32, i32) {
    %c0_i32 = arith.constant 0 : i32
    %c0_i32_0 = arith.constant 0 : i32
    %c0_i32_1 = arith.constant 0 : i32
    %c0_i32_2 = arith.constant 0 : i32
    return %c0_i32, %c0_i32_0, %c0_i32_1 : i32, i32, i32
  }
  func.func @transform_3(%arg0: i32, %arg1: i32, %arg2: i32) -> (i32, i32) {
    %c0_i32 = arith.constant 0 : i32
    %c0_i32_0 = arith.constant 0 : i32
    %c0_i32_1 = arith.constant 0 : i32
    return %c0_i32, %c0_i32_0 : i32, i32
  }
  func.func @transform_4(%arg0: i32, %arg1: i32, %arg2: i32) -> i32 {
    %c0_i32 = arith.constant 0 : i32
    %c0_i32_0 = arith.constant 0 : i32
    return %c0_i32 : i32
  }
  func.func @transform_5(%arg0: i32, %arg1: i32, %arg2: i32) -> (i32, i32) {
    %c0_i32 = arith.constant 0 : i32
    %c0_i32_0 = arith.constant 0 : i32
    %c0_i32_1 = arith.constant 0 : i32
    return %c0_i32, %c0_i32_0 : i32, i32
  }
  func.func @transform_6(%arg0: i32, %arg1: i32, %arg2: i32) -> i32 {
    %c0_i32 = arith.constant 0 : i32
    %c0_i32_0 = arith.constant 0 : i32
    return %c0_i32 : i32
  }
  func.func @transform_7(%arg0: i32, %arg1: i32, %arg2: i32) -> (i32, i32, i32, i32) {
    %c0_i32 = arith.constant 0 : i32
    %c0_i32_0 = arith.constant 0 : i32
    return %arg0, %c0_i32, %arg1, %arg2 : i32, i32, i32, i32
  }
}

</mosaic_0001>

<bundles_post_ra>
// kernel: avif_adaptive_transform.1
= control target key start
LH: loop header
LB: loop body
LE: loop exit
PB: predicated region body
PF: predicated region fallthrough
CT: control target
= control target key end

     0   :  { %s3299_s0 = inlined_call_operand.vmem [shape: f32[2,4,16,16], index: 0, kind: input, shape index: {}]   ;;  %s3300_s1 = inlined_call_operand.vmem [shape: f32[4,16,16], index: 1, kind: input, shape index: {}]   ;;  %s3301_s2 = inlined_call_operand.vmem [shape: f32[4,16,16], index: 2, kind: input, shape index: {}]   ;;  %s3302_s3 = inlined_call_operand.vmem [shape: f32[4,4], index: 3, kind: input, shape index: {}]   ;;  %s3303_s4 = inlined_call_operand.vmem [shape: f32[4], index: 4, kind: input, shape index: {}]   ;;  %s3304_s5 = inlined_call_operand.vmem [shape: f32[4,4], index: 5, kind: input, shape index: {}]   ;;  %s3305_s6 = inlined_call_operand.vmem [shape: f32[4], index: 6, kind: input, shape index: {}]   ;;  %s3306_s7 = inlined_call_operand.hbm [shape: f32[2,4,16,16], index: 7, kind: output, shape index: {}]  }
   0x1   :  { %3343 = sst [smem:[#allocation45_spill]] %s3306_s7 }
   0x2   :  { %12 = vsyncpa [#allocation4], 0 }
   0x3   :  { %13 = vsyncpa [#allocation6], 0 }
   0x4   :  { %14 = vsyncpa [#allocation9], 0  ;;  %s38_s26 = sshll.u32 %s3303_s4, 4  ;;  %s39_s26 = int_to_ptr.vmem [resolvable:$true] %s38_s26 }
   0x5   :  { %15 = vsyncpa [#allocation3], 0  ;;  %s28_s29 = sshll.u32 %s3302_s3, 4  ;;  %s2456_s30 = scalar_lea.vmem %s39_s26, 16  ;;  %s29_s29 = int_to_ptr.vmem [resolvable:$true] %s28_s29 }
   0x6   :  { %p2457_p0 = scmp.ne.s32.totalorder %s39_s26, %s2456_s30  ;;  %p2461_p1 = scmp.lt.s32.totalorder %s39_s26, %s39_s26 }
   0x7   :  { %p2462_p2 = scmp.lt.s32.totalorder %s2456_s30, %s2456_s30 }
   0x9   :  { %p2463_p3 = por %p2462_p2, %p2461_p1 }
   0xb   :  { %p2464_p4 = pnand %p2463_p3, %p2457_p0 }
   0xd   :  { %2467 = shalt.err (!%p2464_p4)
}
   0xe   :  { %s2534_s8 = smov [#allocation5]   ;;  %s2468_s9 = scalar_lea.vmem %s29_s29, 64 }
   0xf   :  { %41 = dma.vmem_to_smem %s39_s26, 16, %s2534_s8, [#allocation6]  }
  0x10   :  { %p2469_p5 = scmp.ne.s32.totalorder %s29_s29, %s2468_s9  ;;  %p2473_p6 = scmp.lt.s32.totalorder %s29_s29, %s29_s29 }
  0x11   :  { %p2474_p7 = scmp.lt.s32.totalorder %s2468_s9, %s2468_s9 }
  0x13   :  { %p2475_p8 = por %p2474_p7, %p2473_p6 }
  0x15   :  { %p2476_p9 = pnand %p2475_p8, %p2469_p5 }
  0x17   :  { %2479 = shalt.err (!%p2476_p9)
}
  0x18   :  { %s2535_s4 = smov [#allocation2]   ;;  %s48_s11 = sshll.u32 %s3304_s5, 4  ;;  %s49_s11 = int_to_ptr.vmem [resolvable:$true] %s48_s11 }
  0x19   :  { %31 = dma.vmem_to_smem %s29_s29, 64, %s2535_s4, [#allocation4]  }
  0x1a   :  { %s58_s14 = sshll.u32 %s3305_s6, 4  ;;  %s2480_s15 = scalar_lea.vmem %s49_s11, 64  ;;  %s59_s14 = int_to_ptr.vmem [resolvable:$true] %s58_s14 }
  0x1b   :  { %p2481_p10 = scmp.ne.s32.totalorder %s49_s11, %s2480_s15  ;;  %p2485_p11 = scmp.lt.s32.totalorder %s49_s11, %s49_s11 }
  0x1c   :  { %p2486_p12 = scmp.lt.s32.totalorder %s2480_s15, %s2480_s15 }
  0x1e   :  { %p2487_p13 = por %p2486_p12, %p2485_p11 }
  0x20   :  { %p2488_p0 = pnand %p2487_p13, %p2481_p10 }
  0x22   :  { %2491 = shalt.err (!%p2488_p0)
}
  0x23   :  { %s2536_s16 = smov [#allocation7]   ;;  %s2492_s17 = scalar_lea.vmem %s59_s14, 16 }
  0x24   :  { %51 = dma.vmem_to_smem %s49_s11, 64, %s2536_s16, [#allocation6]  }
  0x25   :  { %p2493_p1 = scmp.ne.s32.totalorder %s59_s14, %s2492_s17  ;;  %p2497_p2 = scmp.lt.s32.totalorder %s59_s14, %s59_s14 }
  0x26   :  { %p2498_p3 = scmp.lt.s32.totalorder %s2492_s17, %s2492_s17 }
  0x28   :  { %p2499_p4 = por %p2498_p3, %p2497_p2 }
  0x2a   :  { %p2500_p5 = pnand %p2499_p4, %p2493_p1 }
  0x2c   :  { %2503 = shalt.err (!%p2500_p5)
}
  0x2d   :  { %s2537_s5 = smov [#allocation8]  }
  0x2e   :  { %61 = dma.vmem_to_smem %s59_s14, 16, %s2537_s5, [#allocation9]  }
  0x2f   :  { %2526 = dma.done.wait [#allocation4], 64  }
  0x30   :  { %2527 = vsyncadd [#allocation4], 4294967232 }
  0x31   :  { %2528 = dma.done.wait [#allocation6], 80  }
  0x32   :  { %2529 = vsyncadd [#allocation6], 4294967216 }
  0x33   :  { %2530 = dma.done.wait [#allocation9], 16  }
  0x34   :  { %2531 = vsyncadd [#allocation9], 4294967280 }
  0x35   :  { %74 = sfence }
  0x36   :  { %v75_v0 = vld [vmem:[%s3299_s0] sm:$0xff]  ;;  %v76_v1 = vld [vmem:[%s3299_s0 + $0x8] sm:$0xff]  ;;  %vm79_vm0 = vcmask 130048   ;;  %v2007_v4 = vld [vmem:[%s3299_s0 + $0x10] sm:$0xff]  ;;  %s2729_s25 = sld [smem:[#allocation2 + $0x80]]  ;;  %s2735_s28 = sld [smem:[#allocation2 + $0x1]] }
  0x37   :  { %v77_v2 = vld [vmem:[%s3300_s1] sm:$0xff]  ;;  %v2321_v3 = vpack.c.bf16 %v76_v1, %v75_v0  ;;  %v2008_v5 = vld [vmem:[%s3299_s0 + $0x18] sm:$0xff]  ;;  %v2018_v8 = vld [vmem:[%s3299_s0 + $0x28] sm:$0xff]  ;;  %s2731_s26 = sld [smem:[#allocation2 + $0x100]]  ;;  %s2737_s29 = sld [smem:[#allocation2 + $0x81]] }
  0x38   :  { %2213 = vmatprep.mubr.msk.f32.mxu0 %vm79_vm0, %v77_v2  ;;  %v2329_v6 = vpack.c.bf16 %v2008_v5, %v2007_v4  ;;  %v2017_v7 = vld [vmem:[%s3299_s0 + $0x20] sm:$0xff]  ;;  %v78_v9 = vld [vmem:[%s3300_s1 + $0x8] sm:$0xff]  ;;  %v2009_v10 = vld [vmem:[%s3300_s1 + $0x10] sm:$0xff]  ;;  %s2733_s27 = sld [smem:[#allocation2 + $0x180]]  ;;  %s2739_s30 = sld [smem:[#allocation2 + $0x101]] }
  0x39   :  { %2322 = vmatprep.subr.bf16.mxu0 %v2321_v3  ;;  %v2337_v11 = vpack.c.bf16 %v2018_v8, %v2017_v7  ;;  %v2027_v12 = vld [vmem:[%s3299_s0 + $0x30] sm:$0xff]  ;;  %v2028_v13 = vld [vmem:[%s3299_s0 + $0x38] sm:$0xff]  ;;  %v161_v15 = vld [vmem:[%s3301_s2] sm:$0xff]  ;;  %s2741_s8 = sld [smem:[#allocation2 + $0x181]]  ;;  %s2743_s9 = sld [smem:[#allocation2 + $0x2]] }
  0x3a   :  { %2324 = vmatpush3.bf16.msra.mxu0 %v2321_v3  ;;  %v2010_v14 = vld [vmem:[%s3300_s1 + $0x18] sm:$0xff]  ;;  %v162_v16 = vld [vmem:[%s3301_s2 + $0x8] sm:$0xff]  ;;  %v2019_v17 = vld [vmem:[%s3300_s1 + $0x20] sm:$0xff]  ;;  %v2345_v18 = vpack.c.bf16 %v2028_v13, %v2027_v12  ;;  %s2745_s4 = sld [smem:[#allocation2 + $0x82]]  ;;  %s2751_s11 = sld [smem:[#allocation2 + $0x3]] }
  0x3b   :  { %2330 = vmatprep.subr.bf16.mxu0 %v2329_v6  ;;  %v2641_v19 = vpack.c.bf16 %v162_v16, %v161_v15  ;;  %v2073_v20 = vld [vmem:[%s3299_s0 + $0x40] sm:$0xff]  ;;  %v2074_v21 = vld [vmem:[%s3299_s0 + $0x48] sm:$0xff]  ;;  %v2029_v23 = vld [vmem:[%s3300_s1 + $0x30] sm:$0xff]  ;;  %s2747_s3 = sld [smem:[#allocation2 + $0x102]]  ;;  %s2753_s12 = sld [smem:[#allocation2 + $0x83]] }
  0x3c   :  { %v2020_v22 = vld [vmem:[%s3300_s1 + $0x28] sm:$0xff]  ;;  %v2353_v24 = vpack.c.bf16 %v2074_v21, %v2073_v20  ;;  %v2079_v25 = vld [vmem:[%s3299_s0 + $0x50] sm:$0xff]  ;;  %v2080_v26 = vld [vmem:[%s3299_s0 + $0x58] sm:$0xff]  ;;  %s2749_s10 = sld [smem:[#allocation2 + $0x182]]  ;;  %s2755_s13 = sld [smem:[#allocation2 + $0x103]]  ;;  %v2803_v61 = vstv %s2729_s25 }
  0x3d   :  { %2214 = vmatmul.mubr.msk.f32.vlgmr.msra.gmra.mrb[0].mxu0 %vm79_vm0, %v78_v9  ;;  %2326 = vmatprep.subr.bf16.mxu1 %v2641_v19  ;;  %v2030_v27 = vld [vmem:[%s3300_s1 + $0x38] sm:$0xff]  ;;  %v2361_v28 = vpack.c.bf16 %v2080_v26, %v2079_v25  ;;  %v2089_v29 = vld [vmem:[%s3299_s0 + $0x60] sm:$0xff]  ;;  %v2090_v30 = vld [vmem:[%s3299_s0 + $0x68] sm:$0xff]  ;;  %s2757_s14 = sld [smem:[#allocation2 + $0x183]]  ;;  %s2759_s1 = sld [smem:[#allocation5]]  ;;  %v2806_v62 = vstv %s2731_s26 }
  0x3e   :  { %2332 = vmatpush3.bf16.msra.mxu0 %v2329_v6  ;;  %2227 = vmatprep.mubr.msk.f32.mxu0 %vm79_vm0, %v2009_v10  ;;  %v2369_v31 = vpack.c.bf16 %v2090_v30, %v2089_v29  ;;  %v2099_v32 = vld [vmem:[%s3299_s0 + $0x70] sm:$0xff]  ;;  %v2100_v33 = vld [vmem:[%s3299_s0 + $0x78] sm:$0xff]  ;;  %v2023_v38 = vld [vmem:[%s3301_s2 + $0x20] sm:$0xff]  ;;  %s2761_s15 = sld [smem:[#allocation5 + $0x1]]  ;;  %s2763_s0 = sld [smem:[#allocation5 + $0x2]]  ;;  %3351 = vst [vmem:[#allocation22_spill] sm:$0xff] %v2806_v62  ;;  %v2809_v63 = vstv %s2733_s27 }
  0x3f   :  { %2338 = vmatprep.subr.bf16.mxu0 %v2337_v11  ;;  %2328 = vmatpush3.bf16.msra.mxu1 %v2641_v19  ;;  %v2377_v34 = vpack.c.bf16 %v2100_v33, %v2099_v32  ;;  %v2013_v35 = vld [vmem:[%s3301_s2 + $0x10] sm:$0xff]  ;;  %v2014_v36 = vld [vmem:[%s3301_s2 + $0x18] sm:$0xff]  ;;  %v2024_v39 = vld [vmem:[%s3301_s2 + $0x28] sm:$0xff]  ;;  %s2765_s16 = sld [smem:[#allocation5 + $0x3]]  ;;  %s2767_s17 = sld [smem:[#allocation7]]  ;;  %3352 = vst [vmem:[#allocation23_spill] sm:$0xff] %v2809_v63  ;;  %v2816_v0 = vstv %s2735_s28 }
  0x40   :  { %v2333_v37 = vpack.c.bf16 %v2014_v36, %v2013_v35  ;;  %v2341_v42 = vpack.c.bf16 %v2024_v39, %v2023_v38  ;;  %v2033_v43 = vld [vmem:[%s3301_s2 + $0x30] sm:$0xff]  ;;  %v2034_v44 = vld [vmem:[%s3301_s2 + $0x38] sm:$0xff]  ;;  %s2727_s2 = sld [smem:[#allocation2]]  ;;  %s2769_s5 = sld [smem:[#allocation7 + $0x1]]  ;;  %3353 = vst [vmem:[#allocation24_spill] sm:$0xff] %v2816_v0  ;;  %v2819_v1 = vstv %s2737_s29  ;;  %v2825_v3 = vstv %s2741_s8 }
  0x41   :  { %2228 = vmatmul.mubr.msk.f32.vlgmr.msra.gmra.mrb[2].mxu0 %vm79_vm0, %v2010_v14  ;;  %v2349_v47 = vpack.c.bf16 %v2034_v44, %v2033_v43  ;;  %s2771_s6 = sld [smem:[#allocation7 + $0x2]]  ;;  %s2773_s18 = sld [smem:[#allocation7 + $0x3]]  ;;  %3354 = vst [vmem:[#allocation25_spill] sm:$0xff] %v2819_v1  ;;  %v2832_v4 = vstv %s2743_s9  ;;  %v2835_v5 = vstv %s2745_s4  ;;  %v2838_v6 = vstv %s2747_s3 }
  0x42   :  { %2340 = vmatpush3.bf16.msra.mxu0 %v2337_v11  ;;  %2241 = vmatprep.mubr.msk.f32.mxu0 %vm79_vm0, %v2019_v17  ;;  %s2775_s19 = sld [smem:[#allocation7 + $0x80]]  ;;  %s2777_s20 = sld [smem:[#allocation7 + $0x81]]  ;;  %v2841_v7 = vstv %s2749_s10  ;;  %v2844_v8 = vstv %s2751_s11 }
  0x43   :  { %2346 = vmatprep.subr.bf16.mxu0 %v2345_v18  ;;  %2334 = vmatprep.subr.bf16.mxu1 %v2333_v37  ;;  %s2779_s21 = sld [smem:[#allocation7 + $0x82]]  ;;  %s2781_s22 = sld [smem:[#allocation7 + $0x83]]  ;;  %v2853_v11 = vstv %s2757_s14  ;;  %v2856_v12 = vstv %s2759_s1 }
  0x44   :  { %s2783_s23 = sld [smem:[#allocation7 + $0x100]]  ;;  %s2785_s24 = sld [smem:[#allocation7 + $0x101]]  ;;  %3363 = vst [vmem:[#allocation29_spill] sm:$0xff] %v2853_v11  ;;  %v2859_v13 = vstv %s2761_s15 }
  0x45   :  { %2242 = vmatmul.mubr.msk.f32.vlgmr.msra.gmra.mrb[4].mxu0 %vm79_vm0, %v2020_v22  ;;  %s2787_s7 = sld [smem:[#allocation7 + $0x102]]  ;;  %s2829_s26 = sld [smem:[#allocation8 + $0x3]]  ;;  %v2865_v15 = vstv %s2765_s16  ;;  %v2868_v16 = vstv %s2767_s17 }
  0x46   :  { %2348 = vmatpush3.bf16.msra.mxu0 %v2345_v18  ;;  %2255 = vmatprep.mubr.msk.f32.mxu0 %vm79_vm0, %v2029_v23  ;;  %v2800_v60 = vstv %s2727_s2  ;;  %s2827_s2 = sld [smem:[#allocation8 + $0x2]]  ;;  %3365 = vst [vmem:[#allocation31_spill] sm:$0xff] %v2865_v15 }
  0x47   :  { %2354 = vmatprep.subr.bf16.mxu0 %v2353_v24  ;;  %3344 = sst [smem:[#allocation15_spill]] %s2771_s6 }
  0x48   :  { %3345 = sst [smem:[#allocation16_spill]] %s2773_s18  ;;  %s2789_s18 = sld [smem:[#allocation7 + $0x103]]  ;;  %v2880_v20 = vstv %s2775_s19 }
  0x49   :  { %2256 = vmatmul.mubr.msk.f32.vlgmr.msra.gmra.mrb[6].mxu0 %vm79_vm0, %v2030_v27  ;;  %3346 = sst [smem:[#allocation17_spill]] %s2777_s20  ;;  %s2791_s6 = sld [smem:[#allocation7 + $0x180]] }
  0x4a   :  { %2356 = vmatpush3.bf16.msra.mxu0 %v2353_v24  ;;  %2269 = vmatprep.mubr.msk.f32.mxu0 %vm79_vm0, %v77_v2  ;;  %3347 = sst [smem:[#allocation18_spill]] %s2779_s21  ;;  %s2793_s20 = sld [smem:[#allocation7 + $0x181]]  ;;  %v2822_v2 = vstv %s2739_s30  ;;  %v2894_v25 = vstv %s2783_s23  ;;  %v2897_v26 = vstv %s2785_s24 }
  0x4b   :  { %2362 = vmatprep.subr.bf16.mxu0 %v2361_v28  ;;  %3348 = sst [smem:[#allocation19_spill]] %s2781_s22  ;;  %s2795_s21 = sld [smem:[#allocation7 + $0x182]]  ;;  %3355 = vst [vmem:[#allocation26_spill] sm:$0xff] %v2822_v2 }
  0x4c   :  { %s2797_s22 = sld [smem:[#allocation7 + $0x183]]  ;;  %s3356_s25 = sld [smem:[#allocation15_spill]]  ;;  %v2926_v36 = vstv %s2827_s2 }
  0x4d   :  { %2270 = vmatmul.mubr.msk.f32.vlgmr.msra.gmra.mrb[8].mxu0 %vm79_vm0, %v78_v9  ;;  %s3357_s27 = sld [smem:[#allocation16_spill]]  ;;  %s3358_s28 = sld [smem:[#allocation17_spill]]  ;;  %v2847_v9 = vstv %s2753_s12 }
  0x4e   :  { %2364 = vmatpush3.bf16.msra.mxu0 %v2361_v28  ;;  %2283 = vmatprep.mubr.msk.f32.mxu0 %vm79_vm0, %v2009_v10  ;;  %s3359_s29 = sld [smem:[#allocation18_spill]]  ;;  %s3360_s30 = sld [smem:[#allocation19_spill]]  ;;  %3361 = vst [vmem:[#allocation27_spill] sm:$0xff] %v2847_v9  ;;  %v2850_v10 = vstv %s2755_s13  ;;  %v2903_v28 = vstv %s2789_s18 }
  0x4f   :  { %2370 = vmatprep.subr.bf16.mxu0 %v2369_v31  ;;  %3362 = vst [vmem:[#allocation28_spill] sm:$0xff] %v2850_v10  ;;  %v2908_v30 = vstv %s2791_s6 }
  0x50   :  { %3349 = sst [smem:[#allocation20_spill]] %s2793_s20  ;;  %s2811_s20 = sld [smem:[#allocation8]] }
  0x51   :  { %2284 = vmatmul.mubr.msk.f32.vlgmr.msra.gmra.mrb[10].mxu0 %vm79_vm0, %v2010_v14  ;;  %3350 = sst [smem:[#allocation21_spill]] %s2795_s21  ;;  %s2813_s21 = sld [smem:[#allocation8 + $0x1]]  ;;  %v2862_v14 = vstv %s2763_s0 }
  0x52   :  { %2372 = vmatpush3.bf16.msra.mxu0 %v2369_v31  ;;  %2297 = vmatprep.mubr.msk.f32.mxu0 %vm79_vm0, %v2019_v17  ;;  %3364 = vst [vmem:[#allocation30_spill] sm:$0xff] %v2862_v14  ;;  %s3366_s8 = sld [smem:[#allocation20_spill]]  ;;  %s3367_s9 = sld [smem:[#allocation21_spill]]  ;;  %v2871_v17 = vstv %s2769_s5  ;;  %v2874_v18 = vstv %s3356_s25  ;;  %v2917_v33 = vstv %s2797_s22 }
  0x53   :  { %2378 = vmatprep.subr.bf16.mxu0 %v2377_v34  ;;  %v2883_v21 = vstv %s3358_s28  ;;  %3371 = vst [vmem:[#allocation35_spill] sm:$0xff] %v2917_v33 }
  0x55   :  { %2298 = vmatmul.mubr.msk.f32.vlgmr.msra.gmra.mrb[12].mxu0 %vm79_vm0, %v2020_v22  ;;  %v2886_v22 = vstv %s3359_s29 }
  0x56   :  { %2380 = vmatpush3.bf16.msra.mxu0 %v2377_v34  ;;  %2311 = vmatprep.mubr.msk.f32.mxu0 %vm79_vm0, %v2029_v23  ;;  %v2889_v23 = vstv %s3360_s30  ;;  %v2920_v34 = vstv %s2811_s20 }
  0x57   :  { %v2923_v35 = vstv %s2813_s21 }
  0x58   :  { %v2911_v31 = vstv %s3366_s8  ;;  %v2914_v32 = vstv %s3367_s9 }
  0x59   :  { %2312 = vmatmul.mubr.msk.f32.vlgmr.msra.gmra.mrb[14].mxu0 %vm79_vm0, %v2030_v27  ;;  %v2900_v27 = vstv %s2787_s7  ;;  %s2538_s7 = smov [#allocation10]  }
  0x5a   :  { %s1989_s4 = sshll.u32 %s2538_s7, 4  ;;  %s1990_s4 = int_to_ptr.vmem [resolvable:$true] %s1989_s4 }
  0x5b   :  { %s2504_s3 = scalar_lea.vmem %s1990_s4, 2048  ;;  %p2509_p7 = scmp.lt.s32.totalorder %s1990_s4, %s1990_s4 }
  0x5c   :  { %p2505_p6 = scmp.ne.s32.totalorder %s1990_s4, %s2504_s3  ;;  %p2510_p8 = scmp.lt.s32.totalorder %s2504_s3, %s2504_s3 }
  0x5e   :  { %p2511_p9 = por %p2510_p8, %p2509_p7 }
  0x60   :  { %p2512_p10 = pnand %p2511_p9, %p2505_p6 }
 0x110   :  { %v2215_v40 = vpop.f32.mrb[0].mxu0 }
 0x111   :  { %v152_v41 = vpop.f32.mrb[1].mxu0 }
 0x112   :  { %2220 = vmatprep.mubr.msk.f32.mxu1 %vm79_vm0, %v152_v41 }
 0x113   :  { %2221 = vmatmul.mubr.msk.f32.vlgmr.msra.gmra.mrb[0].mxu1 %vm79_vm0, %v2215_v40 }
 0x114   :  { %v2229_v45 = vpop.f32.mrb[2].mxu0  ;;  %2336 = vmatpush3.bf16.msra.mxu1 %v2333_v37 }
 0x115   :  { %v322_v46 = vpop.f32.mrb[3].mxu0  ;;  %2342 = vmatprep.subr.bf16.mxu1 %v2341_v42 }
 0x116   :  { %2234 = vmatprep.mubr.msk.f32.mxu1 %vm79_vm0, %v322_v46 }
 0x117   :  { %2235 = vmatmul.mubr.msk.f32.vlgmr.msra.gmra.mrb[2].mxu1 %vm79_vm0, %v2229_v45 }
 0x118   :  { %v2243_v48 = vpop.f32.mrb[4].mxu0  ;;  %2344 = vmatpush3.bf16.msra.mxu1 %v2341_v42 }
 0x119   :  { %v493_v49 = vpop.f32.mrb[5].mxu0  ;;  %2350 = vmatprep.subr.bf16.mxu1 %v2349_v47 }
 0x11a   :  { %2248 = vmatprep.mubr.msk.f32.mxu1 %vm79_vm0, %v493_v49 }
 0x11b   :  { %2249 = vmatmul.mubr.msk.f32.vlgmr.msra.gmra.mrb[4].mxu1 %vm79_vm0, %v2243_v48 }
 0x11c   :  { %v2257_v50 = vpop.f32.mrb[6].mxu0  ;;  %2352 = vmatpush3.bf16.msra.mxu1 %v2349_v47 }
 0x11d   :  { %v664_v51 = vpop.f32.mrb[7].mxu0  ;;  %2358 = vmatprep.subr.bf16.mxu1 %v2641_v19 }
 0x11e   :  { %2262 = vmatprep.mubr.msk.f32.mxu1 %vm79_vm0, %v664_v51 }
 0x11f   :  { %2263 = vmatmul.mubr.msk.f32.vlgmr.msra.gmra.mrb[6].mxu1 %vm79_vm0, %v2257_v50 }
 0x120   :  { %v2271_v52 = vpop.f32.mrb[8].mxu0  ;;  %2360 = vmatpush3.bf16.msra.mxu1 %v2641_v19  ;;  %v2877_v19 = vstv %s3357_s27 }
 0x121   :  { %v1109_v53 = vpop.f32.mrb[9].mxu0  ;;  %2366 = vmatprep.subr.bf16.mxu1 %v2333_v37  ;;  %3368 = vst [vmem:[#allocation32_spill] sm:$0xff] %v2877_v19 }
 0x122   :  { %2276 = vmatprep.mubr.msk.f32.mxu1 %vm79_vm0, %v1109_v53 }
 0x123   :  { %2277 = vmatmul.mubr.msk.f32.vlgmr.msra.gmra.mrb[8].mxu1 %vm79_vm0, %v2271_v52 }
 0x124   :  { %v2285_v54 = vpop.f32.mrb[10].mxu0  ;;  %2368 = vmatpush3.bf16.msra.mxu1 %v2333_v37  ;;  %v2929_v37 = vstv %s2829_s26 }
 0x125   :  { %v1278_v55 = vpop.f32.mrb[11].mxu0  ;;  %2374 = vmatprep.subr.bf16.mxu1 %v2341_v42 }
 0x126   :  { %2290 = vmatprep.mubr.msk.f32.mxu1 %vm79_vm0, %v1278_v55 }
 0x127   :  { %2291 = vmatmul.mubr.msk.f32.vlgmr.msra.gmra.mrb[10].mxu1 %vm79_vm0, %v2285_v54 }
 0x128   :  { %v2299_v56 = vpop.f32.mrb[12].mxu0  ;;  %2376 = vmatpush3.bf16.msra.mxu1 %v2341_v42 }
 0x129   :  { %v1447_v57 = vpop.f32.mrb[13].mxu0  ;;  %2382 = vmatprep.subr.bf16.mxu1 %v2349_v47 }
 0x12a   :  { %2304 = vmatprep.mubr.msk.f32.mxu1 %vm79_vm0, %v1447_v57 }
 0x12b   :  { %2305 = vmatmul.mubr.msk.f32.vlgmr.msra.gmra.mrb[12].mxu1 %vm79_vm0, %v2299_v56 }
 0x12c   :  { %v2313_v58 = vpop.f32.mrb[14].mxu0  ;;  %2384 = vmatpush3.bf16.msra.mxu1 %v2349_v47 }
 0x12d   :  { %v1616_v59 = vpop.f32.mrb[15].mxu0 }
 0x12e   :  { %2318 = vmatprep.mubr.msk.f32.mxu1 %vm79_vm0, %v1616_v59 }
 0x12f   :  { %2319 = vmatmul.mubr.msk.f32.vlgmr.msra.gmra.mrb[14].mxu1 %vm79_vm0, %v2313_v58 }
 0x1e6   :  { %v2891_v24 = vpop.f32.mrb[0].mxu1 }
 0x1e7   :  { %3369 = vst [vmem:[#allocation33_spill] sm:$0xff] %v2891_v24  ;;  %v2905_v29 = vpop.f32.mrb[1].mxu1  ;;  %v760_v38 = vmul.f32 %v2891_v24, %v2800_v60  ;;  %v788_v39 = vmul.f32 %v2891_v24, %v2803_v61  ;;  %v816_v40 = vmul.f32 %v2891_v24, %v2806_v62  ;;  %v844_v41 = vmul.f32 %v2891_v24, %v2809_v63 }
 0x1e8   :  { %3370 = vst [vmem:[#allocation34_spill] sm:$0xff] %v2905_v29  ;;  %v759_v42 = vmul.f32 %v2800_v60, %v2905_v29  ;;  %v787_v43 = vmul.f32 %v2803_v61, %v2905_v29  ;;  %v815_v44 = vmul.f32 %v2806_v62, %v2905_v29  ;;  %v843_v45 = vmul.f32 %v2809_v63, %v2905_v29 }
 0x1ea   :  { %v2947_v46 = vpop.f32.mrb[2].mxu1 }
 0x1eb   :  { %3372 = vst [vmem:[#allocation36_spill] sm:$0xff] %v2947_v46  ;;  %v764_v47 = vmul.f32 %v2947_v46, %v2816_v0  ;;  %v792_v48 = vmul.f32 %v2947_v46, %v2819_v1  ;;  %v820_v49 = vmul.f32 %v2947_v46, %v2822_v2  ;;  %v848_v50 = vmul.f32 %v2947_v46, %v2825_v3  ;;  %v2957_v51 = vpop.f32.mrb[3].mxu1 }
 0x1ec   :  { %3373 = vst [vmem:[#allocation37_spill] sm:$0xff] %v2957_v51  ;;  %v763_v52 = vmul.f32 %v2816_v0, %v2957_v51  ;;  %v791_v53 = vmul.f32 %v2819_v1, %v2957_v51  ;;  %v819_v54 = vmul.f32 %v2822_v2, %v2957_v51  ;;  %v847_v55 = vmul.f32 %v2825_v3, %v2957_v51 }
 0x1ed   :  { %v766_v56 = vadd.f32 %v764_v47, %v760_v38  ;;  %v794_v57 = vadd.f32 %v792_v48, %v788_v39  ;;  %v822_v58 = vadd.f32 %v820_v49, %v816_v40  ;;  %v850_v59 = vadd.f32 %v848_v50, %v844_v41 }
 0x1ee   :  { %v765_v29 = vadd.f32 %v763_v52, %v759_v42  ;;  %v793_v46 = vadd.f32 %v791_v53, %v787_v43  ;;  %v821_v24 = vadd.f32 %v819_v54, %v815_v44  ;;  %v849_v63 = vadd.f32 %v847_v55, %v843_v45  ;;  %v2967_v62 = vpop.f32.mrb[4].mxu1 }
 0x1ef   :  { %3374 = vst [vmem:[#allocation38_spill] sm:$0xff] %v2967_v62  ;;  %v770_v0 = vmul.f32 %v2967_v62, %v2832_v4  ;;  %v798_v1 = vmul.f32 %v2967_v62, %v2835_v5  ;;  %v826_v2 = vmul.f32 %v2967_v62, %v2838_v6  ;;  %v854_v38 = vmul.f32 %v2967_v62, %v2841_v7  ;;  %v2977_v39 = vpop.f32.mrb[5].mxu1 }
 0x1f0   :  { %3375 = vst [vmem:[#allocation39_spill] sm:$0xff] %v2977_v39  ;;  %v769_v40 = vmul.f32 %v2832_v4, %v2977_v39  ;;  %v797_v41 = vmul.f32 %v2835_v5, %v2977_v39  ;;  %v825_v42 = vmul.f32 %v2838_v6, %v2977_v39  ;;  %v853_v43 = vmul.f32 %v2841_v7, %v2977_v39 }
 0x1f1   :  { %v772_v44 = vadd.f32 %v770_v0, %v766_v56  ;;  %v800_v45 = vadd.f32 %v798_v1, %v794_v57  ;;  %v828_v47 = vadd.f32 %v826_v2, %v822_v58  ;;  %v856_v48 = vadd.f32 %v854_v38, %v850_v59 }
 0x1f2   :  { %v771_v49 = vadd.f32 %v769_v40, %v765_v29  ;;  %v799_v50 = vadd.f32 %v797_v41, %v793_v46  ;;  %v827_v52 = vadd.f32 %v825_v42, %v821_v24  ;;  %v855_v53 = vadd.f32 %v853_v43, %v849_v63  ;;  %v2987_v54 = vpop.f32.mrb[6].mxu1 }
 0x1f3   :  { %3376 = vst [vmem:[#allocation40_spill] sm:$0xff] %v2987_v54  ;;  %v776_v55 = vmul.f32 %v2987_v54, %v2844_v8  ;;  %v804_v51 = vmul.f32 %v2987_v54, %v2847_v9  ;;  %v832_v62 = vmul.f32 %v2987_v54, %v2850_v10  ;;  %v860_v0 = vmul.f32 %v2987_v54, %v2853_v11  ;;  %v2997_v1 = vpop.f32.mrb[7].mxu1 }
 0x1f4   :  { %3377 = vst [vmem:[#allocation41_spill] sm:$0xff] %v2997_v1  ;;  %v775_v2 = vmul.f32 %v2844_v8, %v2997_v1  ;;  %v803_v63 = vmul.f32 %v2847_v9, %v2997_v1  ;;  %v831_v24 = vmul.f32 %v2850_v10, %v2997_v1  ;;  %v859_v29 = vmul.f32 %v2853_v11, %v2997_v1 }
 0x1f5   :  { %v778_v46 = vadd.f32 %v776_v55, %v772_v44  ;;  %v806_v56 = vadd.f32 %v804_v51, %v800_v45  ;;  %v834_v57 = vadd.f32 %v832_v62, %v828_v47  ;;  %v862_v58 = vadd.f32 %v860_v0, %v856_v48 }
 0x1f6   :  { %v777_v59 = vadd.f32 %v775_v2, %v771_v49  ;;  %v805_v38 = vadd.f32 %v803_v63, %v799_v50  ;;  %v833_v40 = vadd.f32 %v831_v24, %v827_v52  ;;  %v861_v41 = vadd.f32 %v859_v29, %v855_v53  ;;  %v3007_v42 = vpop.f32.mrb[8].mxu1 }
 0x1f7   :  { %3378 = vst [vmem:[#allocation42_spill] sm:$0xff] %v3007_v42  ;;  %v782_v43 = vadd.f32 %v2856_v12, %v778_v46  ;;  %v810_v39 = vadd.f32 %v2859_v13, %v806_v56  ;;  %v838_v54 = vadd.f32 %v2862_v14, %v834_v57  ;;  %v866_v10 = vadd.f32 %v2865_v15, %v862_v58  ;;  %v3013_v9 = vpop.f32.mrb[9].mxu1 }
 0x1f8   :  { %3379 = vst [vmem:[#allocation43_spill] sm:$0xff] %v3013_v9  ;;  %v781_v51 = vadd.f32 %v2856_v12, %v777_v59  ;;  %v809_v62 = vadd.f32 %v2859_v13, %v805_v38  ;;  %v837_v44 = vadd.f32 %v2862_v14, %v833_v40  ;;  %v865_v45 = vadd.f32 %v2865_v15, %v861_v41 }
 0x1f9   :  { %v784_v47 = vmax.f32 %v782_v43, 0.0  ;;  %v812_v48 = vmax.f32 %v810_v39, 0.0  ;;  %v840_v49 = vmax.f32 %v838_v54, 0.0  ;;  %v868_v50 = vmax.f32 %v866_v10, 0.0 }
 0x1fa   :  { %v3019_v52 = vmax.f32 %v781_v51, 0.0  ;;  %v3021_v53 = vmax.f32 %v809_v62, 0.0  ;;  %v3023_v55 = vmax.f32 %v837_v44, 0.0  ;;  %v3025_v0 = vmax.f32 %v865_v45, 0.0  ;;  %v3027_v2 = vpop.f32.mrb[10].mxu1 }
 0x1fb   :  { %3380 = vst [vmem:[#allocation44_spill] sm:$0xff] %v3027_v2  ;;  %v872_v63 = vmul.f32 %v2868_v16, %v784_v47  ;;  %v876_v24 = vmul.f32 %v2871_v17, %v812_v48  ;;  %v882_v29 = vmul.f32 %v2874_v18, %v840_v49  ;;  %v888_v39 = vmul.f32 %v2877_v19, %v868_v50  ;;  %v3033_v54 = vpop.f32.mrb[11].mxu1 }
 0x1fc   :  { %v912_v10 = vmul.f32 %v2880_v20, %v784_v47  ;;  %v916_v46 = vmul.f32 %v2883_v21, %v812_v48  ;;  %v922_v56 = vmul.f32 %v2886_v22, %v840_v49  ;;  %v928_v57 = vmul.f32 %v2889_v23, %v868_v50 }
 0x1fd   :  { %v878_v58 = vadd.f32 %v876_v24, %v872_v63  ;;  %v953_v59 = vmul.f32 %v2894_v25, %v784_v47  ;;  %v957_v38 = vmul.f32 %v2897_v26, %v812_v48  ;;  %v963_v40 = vmul.f32 %v2900_v27, %v840_v49 }
 0x1fe   :  { %v918_v41 = vadd.f32 %v916_v46, %v912_v10  ;;  %v969_v43 = vmul.f32 %v2903_v28, %v868_v50  ;;  %v994_v51 = vmul.f32 %v2908_v30, %v784_v47  ;;  %v998_v62 = vmul.f32 %v2911_v31, %v812_v48  ;;  %v3045_v44 = vpop.f32.mrb[12].mxu1 }
 0x1ff   :  { %v884_v45 = vadd.f32 %v882_v29, %v878_v58  ;;  %v959_v1 = vadd.f32 %v957_v38, %v953_v59  ;;  %v1004_v15 = vmul.f32 %v2914_v32, %v840_v49  ;;  %v1010_v63 = vmul.f32 %v2917_v33, %v868_v50  ;;  %v3049_v24 = vpop.f32.mrb[13].mxu1 }
 0x200   :  { %v924_v11 = vadd.f32 %v922_v56, %v918_v41  ;;  %v1000_v14 = vadd.f32 %v998_v62, %v994_v51  ;;  %v871_v10 = vmul.f32 %v2868_v16, %v3019_v52  ;;  %v875_v47 = vmul.f32 %v2871_v17, %v3021_v53 }
 0x201   :  { %v890_v46 = vadd.f32 %v888_v39, %v884_v45  ;;  %v965_v48 = vadd.f32 %v963_v40, %v959_v1  ;;  %v881_v29 = vmul.f32 %v2874_v18, %v3023_v55  ;;  %v887_v49 = vmul.f32 %v2877_v19, %v3025_v0 }
 0x202   :  { %v930_v58 = vadd.f32 %v928_v57, %v924_v11  ;;  %v1006_v50 = vadd.f32 %v1004_v15, %v1000_v14  ;;  %v877_v59 = vadd.f32 %v875_v47, %v871_v10  ;;  %v911_v56 = vmul.f32 %v2880_v20, %v3019_v52  ;;  %v3061_v38 = vpop.f32.mrb[14].mxu1 }
 0x203   :  { %v894_v41 = vadd.f32 %v2920_v34, %v890_v46  ;;  %v971_v51 = vadd.f32 %v969_v43, %v965_v48  ;;  %v915_v1 = vmul.f32 %v2883_v21, %v3021_v53  ;;  %v921_v39 = vmul.f32 %v2886_v22, %v3023_v55  ;;  %v3068_v40 = vpop.f32.mrb[15].mxu1 }
 0x204   :  { %v934_v11 = vadd.f32 %v2923_v35, %v930_v58  ;;  %v1012_v14 = vadd.f32 %v1010_v63, %v1006_v50  ;;  %v883_v15 = vadd.f32 %v881_v29, %v877_v59  ;;  %v927_v57 = vmul.f32 %v2889_v23, %v3025_v0 }
 0x205   :  { %v896_v62 = vsub.f32 0.0, %v894_v41  ;;  %v975_v45 = vadd.f32 %v2926_v36, %v971_v51  ;;  %v917_v10 = vadd.f32 %v915_v1, %v911_v56  ;;  %v952_v43 = vmul.f32 %v2894_v25, %v3019_v52 }
 0x206   :  { %v936_v47 = vsub.f32 0.0, %v934_v11  ;;  %v1016_v46 = vadd.f32 %v2929_v37, %v1012_v14  ;;  %v889_v48 = vadd.f32 %v887_v49, %v883_v15  ;;  %v956_v19 = vmul.f32 %v2897_v26, %v3021_v53 }
 0x207   :  { %v899_v58 = vmul.f32 1.442695, %v896_v62  ;;  %v977_v63 = vsub.f32 0.0, %v975_v45  ;;  %v923_v29 = vadd.f32 %v921_v39, %v917_v10  ;;  %v962_v50 = vmul.f32 %v2900_v27, %v3023_v55 }
 0x208   :  { %v939_v59 = vmul.f32 1.442695, %v936_v47  ;;  %v1018_v41 = vsub.f32 0.0, %v1016_v46  ;;  %v893_v56 = vadd.f32 %v2920_v34, %v889_v48  ;;  %v958_v51 = vadd.f32 %v956_v19, %v952_v43 }
 0x209   :  { %2392 = vpow2.f32 %v899_v58  ;;  %v980_v1 = vmul.f32 1.442695, %v977_v63  ;;  %v929_v11 = vadd.f32 %v927_v57, %v923_v29  ;;  %v968_v49 = vmul.f32 %v2903_v28, %v3025_v0  ;;  %v3381_v63 = vld [vmem:[#allocation22_spill] sm:$0xff] }
 0x20a   :  { %2394 = vpow2.f32 %v939_v59  ;;  %v1021_v14 = vmul.f32 1.442695, %v1018_v41  ;;  %v895_v15 = vsub.f32 0.0, %v893_v56  ;;  %v964_v62 = vadd.f32 %v962_v50, %v958_v51 }
 0x20b   :  { %2396 = vpow2.f32 %v980_v1  ;;  %v933_v39 = vadd.f32 %v2923_v35, %v929_v11  ;;  %v993_v45 = vmul.f32 %v2908_v30, %v3019_v52  ;;  %v997_v10 = vmul.f32 %v2911_v31, %v3021_v53 }
 0x20c   :  { %2398 = vpow2.f32 %v1021_v14  ;;  %v897_v19 = vmul.f32 1.442695, %v895_v15  ;;  %v970_v43 = vadd.f32 %v968_v49, %v964_v62  ;;  %v1003_v57 = vmul.f32 %v2914_v32, %v3023_v55  ;;  %v3382_v55 = vld [vmem:[#allocation23_spill] sm:$0xff]  ;;  %v3383_v14 = vld [vmem:[#allocation24_spill] sm:$0xff]  ;;  %v3384_v62 = vld [vmem:[#allocation25_spill] sm:$0xff] }
 0x20d   :  { %v935_v47 = vsub.f32 0.0, %v933_v39  ;;  %v999_v46 = vadd.f32 %v997_v10, %v993_v45  ;;  %v1009_v48 = vmul.f32 %v2917_v33, %v3025_v0  ;;  %v1711_v58 = vmul.f32 %v3007_v42, %v2800_v60 }
 0x20e   :  { %2400 = vpow2.f32 %v897_v19  ;;  %v974_v52 = vadd.f32 %v2926_v36, %v970_v43  ;;  %v1739_v53 = vmul.f32 %v3007_v42, %v2803_v61  ;;  %v1767_v29 = vmul.f32 %v3007_v42, %v3381_v63 }
 0x20f   :  { %v937_v50 = vmul.f32 1.442695, %v935_v47  ;;  %v1005_v59 = vadd.f32 %v1003_v57, %v999_v46  ;;  %v1795_v41 = vmul.f32 %v3007_v42, %v3382_v55  ;;  %v1710_v0 = vmul.f32 %v3013_v9, %v2800_v60  ;;  %v3385_v60 = vld [vmem:[#allocation26_spill] sm:$0xff] }
 0x210   :  { %v976_v56 = vsub.f32 0.0, %v974_v52  ;;  %v1738_v51 = vmul.f32 %v3013_v9, %v2803_v61  ;;  %v1766_v1 = vmul.f32 %v3013_v9, %v3381_v63  ;;  %v1794_v11 = vmul.f32 %v3013_v9, %v3382_v55 }
 0x211   :  { %2402 = vpow2.f32 %v937_v50  ;;  %v1011_v49 = vadd.f32 %v1009_v48, %v1005_v59  ;;  %v1715_v15 = vmul.f32 %v3027_v2, %v3383_v14  ;;  %v1743_v39 = vmul.f32 %v3027_v2, %v3384_v62 }
 0x212   :  { %v978_v45 = vmul.f32 1.442695, %v976_v56  ;;  %v1771_v10 = vmul.f32 %v3027_v2, %v3385_v60  ;;  %v1799_v61 = vmul.f32 %v3027_v2, %v2825_v3  ;;  %v1714_v19 = vmul.f32 %v3033_v54, %v3383_v14 }
 0x213   :  { %v2393_v43 = vpop.eup %2392  ;;  %v1015_v57 = vadd.f32 %v2929_v37, %v1011_v49  ;;  %v1717_v47 = vadd.f32 %v1715_v15, %v1711_v58  ;;  %v1745_v46 = vadd.f32 %v1743_v39, %v1739_v53  ;;  %v1742_v48 = vmul.f32 %v3033_v54, %v3384_v62 }
 0x214   :  { %v2395_v52 = vpop.eup %2394  ;;  %v902_v63 = vadd.f32 1.0, %v2393_v43  ;;  %2404 = vpow2.f32 %v978_v45  ;;  %v1773_v50 = vadd.f32 %v1771_v10, %v1767_v29  ;;  %v1801_v59 = vadd.f32 %v1799_v61, %v1795_v41 }
 0x215   :  { %v2397_v55 = vpop.eup %2396  ;;  %v942_v56 = vadd.f32 1.0, %v2395_v52  ;;  %v1017_v42 = vsub.f32 0.0, %v1015_v57  ;;  %v1716_v2 = vadd.f32 %v1714_v19, %v1710_v0  ;;  %v1744_v9 = vadd.f32 %v1742_v48, %v1738_v51  ;;  %v3386_v52 = vld [vmem:[#allocation27_spill] sm:$0xff] }
 0x216   :  { %v2399_v33 = vpop.eup %2398  ;;  %2406 = vrcp.f32 %v902_v63  ;;  %v983_v14 = vadd.f32 1.0, %v2397_v55  ;;  %v1770_v58 = vmul.f32 %v3033_v54, %v3385_v60  ;;  %v1798_v53 = vmul.f32 %v3033_v54, %v2825_v3 }
 0x217   :  { %2408 = vrcp.f32 %v942_v56  ;;  %v1024_v49 = vadd.f32 1.0, %v2399_v33  ;;  %v1019_v15 = vmul.f32 1.442695, %v1017_v42  ;;  %v1721_v29 = vmul.f32 %v3045_v44, %v2832_v4 }
 0x218   :  { %v2401_v41 = vpop.eup %2400  ;;  %2410 = vrcp.f32 %v983_v14  ;;  %v1772_v62 = vadd.f32 %v1770_v58, %v1766_v1  ;;  %v1800_v0 = vadd.f32 %v1798_v53, %v1794_v11  ;;  %v1749_v51 = vmul.f32 %v3045_v44, %v2835_v5 }
 0x219   :  { %2412 = vrcp.f32 %v1024_v49  ;;  %v901_v39 = vadd.f32 1.0, %v2401_v41  ;;  %v1723_v45 = vadd.f32 %v1721_v29, %v1717_v47  ;;  %v1777_v60 = vmul.f32 %v3045_v44, %v2838_v6  ;;  %v3388_v29 = vld [vmem:[#allocation33_spill] sm:$0xff] }
 0x21a   :  { %2414 = vpow2.f32 %v1019_v15  ;;  %v1751_v3 = vadd.f32 %v1749_v51, %v1745_v46  ;;  %v1805_v33 = vmul.f32 %v3045_v44, %v2841_v7  ;;  %v1720_v42 = vmul.f32 %v3049_v24, %v2832_v4 }
 0x21b   :  { %v2403_v10 = vpop.eup %2402  ;;  %2416 = vrcp.f32 %v901_v39  ;;  %v1779_v1 = vadd.f32 %v1777_v60, %v1773_v50  ;;  %v1748_v11 = vmul.f32 %v3049_v24, %v2835_v5  ;;  %v1776_v61 = vmul.f32 %v3049_v24, %v2838_v6  ;;  %v3389_v60 = vld [vmem:[#allocation36_spill] sm:$0xff] }
 0x21c   :  { %v941_v19 = vadd.f32 1.0, %v2403_v10  ;;  %v1807_v43 = vadd.f32 %v1805_v33, %v1801_v59  ;;  %v1804_v57 = vmul.f32 %v3049_v24, %v2841_v7  ;;  %v1722_v47 = vadd.f32 %v1720_v42, %v1716_v2  ;;  %v3387_v59 = vld [vmem:[#allocation28_spill] sm:$0xff] }
 0x21d   :  { %v1726_v46 = vmul.f32 %v3068_v40, %v2844_v8  ;;  %v1727_v4 = vmul.f32 %v3061_v38, %v2844_v8  ;;  %v1750_v48 = vadd.f32 %v1748_v11, %v1744_v9  ;;  %v1754_v63 = vmul.f32 %v3068_v40, %v3386_v52 }
 0x21e   :  { %v2405_v5 = vpop.eup %2404  ;;  %2418 = vrcp.f32 %v941_v19  ;;  %v1755_v6 = vmul.f32 %v3061_v38, %v3386_v52  ;;  %v1778_v50 = vadd.f32 %v1776_v61, %v1772_v62  ;;  %v1782_v7 = vmul.f32 %v3068_v40, %v3387_v59 }
 0x21f   :  { %v982_v2 = vadd.f32 1.0, %v2405_v5  ;;  %v1728_v55 = vadd.f32 %v1726_v46, %v1722_v47  ;;  %v1729_v56 = vadd.f32 %v1727_v4, %v1723_v45  ;;  %v1756_v14 = vadd.f32 %v1754_v63, %v1750_v48  ;;  %v3392_v46 = vld [vmem:[#allocation40_spill] sm:$0xff] }
 0x220   :  { %v2407_v58 = vpop.eup %2406  ;;  %v1757_v53 = vadd.f32 %v1755_v6, %v1751_v3  ;;  %v1783_v8 = vmul.f32 %v3061_v38, %v3387_v59  ;;  %v1784_v9 = vadd.f32 %v1782_v7, %v1778_v50  ;;  %v1806_v49 = vadd.f32 %v1804_v57, %v1800_v0  ;;  %v3390_v0 = vld [vmem:[#allocation38_spill] sm:$0xff]  ;;  %v3393_v6 = vld [vmem:[#allocation29_spill] sm:$0xff] }
 0x221   :  { %v2409_v15 = vpop.eup %2408  ;;  %v906_v41 = vmul.f32 %v2407_v58, %v3388_v29  ;;  %2420 = vrcp.f32 %v982_v2  ;;  %v1732_v62 = vadd.f32 %v1728_v55, %v2856_v12  ;;  %v1733_v51 = vadd.f32 %v1729_v56, %v2856_v12  ;;  %v3391_v57 = vld [vmem:[#allocation30_spill] sm:$0xff] }
 0x222   :  { %v2411_v39 = vpop.eup %2410  ;;  %v946_v33 = vmul.f32 %v2409_v15, %v3389_v60  ;;  %v1760_v45 = vadd.f32 %v1756_v14, %v2859_v13  ;;  %v1761_v3 = vadd.f32 %v1757_v53, %v2859_v13  ;;  %v1785_v42 = vadd.f32 %v1783_v8, %v1779_v1  ;;  %v3394_v7 = vld [vmem:[#allocation34_spill] sm:$0xff] }
 0x223   :  { %v2413_v10 = vpop.eup %2412  ;;  %908 = vst.msk [vmem:[#allocation10 + $0x8] sm:$0xff] %vm79_vm0, %v906_v41  ;;  %v987_v11 = vmul.f32 %v2411_v39, %v3390_v0  ;;  %v3163_v61 = vmax.f32 %v1732_v62, 0.0  ;;  %v3165_v19 = vmax.f32 %v1733_v51, 0.0  ;;  %v1788_v47 = vadd.f32 %v1784_v9, %v3391_v57  ;;  %v3396_v62 = vld [vmem:[#allocation31_spill] sm:$0xff] }
 0x224   :  { %v2415_v12 = vpop.eup %2414  ;;  %949 = vst.msk [vmem:[#allocation10 + $0x18] sm:$0xff] %vm79_vm0, %v946_v33  ;;  %v1028_v4 = vmul.f32 %v2413_v10, %v3392_v46  ;;  %v3170_v48 = vmax.f32 %v1760_v45, 0.0  ;;  %v3172_v13 = vmax.f32 %v1761_v3, 0.0  ;;  %v1789_v1 = vadd.f32 %v1785_v42, %v3391_v57  ;;  %v3397_v57 = vld [vmem:[#allocation39_spill] sm:$0xff] }
 0x225   :  { %v2417_v52 = vpop.eup %2416  ;;  %990 = vst.msk [vmem:[#allocation10 + $0x28] sm:$0xff] %vm79_vm0, %v987_v11  ;;  %v1023_v63 = vadd.f32 1.0, %v2415_v12  ;;  %v3176_v5 = vmax.f32 %v1788_v47, 0.0  ;;  %v1810_v50 = vmul.f32 %v3068_v40, %v3393_v6  ;;  %v1811_v59 = vmul.f32 %v3061_v38, %v3393_v6 }
 0x226   :  { %1031 = vst.msk [vmem:[#allocation10 + $0x38] sm:$0xff] %vm79_vm0, %v1028_v4  ;;  %v905_v2 = vmul.f32 %v2417_v52, %v3394_v7  ;;  %v3184_v55 = vmax.f32 %v1789_v1, 0.0  ;;  %v1822_v56 = vmul.f32 %v3163_v61, %v2868_v16  ;;  %v1823_v14 = vmul.f32 %v3165_v19, %v2868_v16  ;;  %v3398_v4 = vld [vmem:[#allocation32_spill] sm:$0xff] }
 0x227   :  { %2422 = vrcp.f32 %v1023_v63  ;;  %v1812_v58 = vadd.f32 %v1810_v50, %v1806_v49  ;;  %v1813_v53 = vadd.f32 %v1811_v59, %v1807_v43  ;;  %v1826_v8 = vmul.f32 %v3170_v48, %v2871_v17  ;;  %v3395_v49 = vld [vmem:[#allocation37_spill] sm:$0xff] }
 0x228   :  { %v2419_v9 = vpop.eup %2418  ;;  %907 = vst.msk [vmem:[#allocation10] sm:$0xff] %vm79_vm0, %v905_v2  ;;  %v1827_v15 = vmul.f32 %v3172_v13, %v2871_v17  ;;  %v1832_v29 = vmul.f32 %v3176_v5, %v2874_v18  ;;  %v1833_v41 = vmul.f32 %v3184_v55, %v2874_v18  ;;  %v1863_v16 = vmul.f32 %v3163_v61, %v2880_v20 }
 0x229   :  { %v945_v43 = vmul.f32 %v2419_v9, %v3395_v49  ;;  %v1816_v51 = vadd.f32 %v1812_v58, %v3396_v62  ;;  %v1817_v39 = vadd.f32 %v1813_v53, %v3396_v62  ;;  %v1828_v60 = vadd.f32 %v1826_v8, %v1822_v56 }
 0x22a   :  { %v1829_v33 = vadd.f32 %v1827_v15, %v1823_v14  ;;  %v1864_v17 = vmul.f32 %v3165_v19, %v2880_v20  ;;  %v1867_v45 = vmul.f32 %v3170_v48, %v2883_v21  ;;  %v1868_v18 = vmul.f32 %v3172_v13, %v2883_v21 }
 0x22b   :  { %v2421_v3 = vpop.eup %2420  ;;  %948 = vst.msk [vmem:[#allocation10 + $0x10] sm:$0xff] %vm79_vm0, %v945_v43  ;;  %v3211_v42 = vmax.f32 %v1816_v51, 0.0  ;;  %v3213_v10 = vmax.f32 %v1817_v39, 0.0  ;;  %v1834_v0 = vadd.f32 %v1832_v29, %v1828_v60  ;;  %v1873_v11 = vmul.f32 %v3176_v5, %v2886_v22 }
 0x22c   :  { %v986_v47 = vmul.f32 %v2421_v3, %v3397_v57  ;;  %v1835_v20 = vadd.f32 %v1833_v41, %v1829_v33  ;;  %v1869_v12 = vadd.f32 %v1867_v45, %v1863_v16  ;;  %v1870_v46 = vadd.f32 %v1868_v18, %v1864_v17  ;;  %v3399_v16 = vld [vmem:[#allocation41_spill] sm:$0xff] }
 0x22d   :  { %v1838_v1 = vmul.f32 %v3211_v42, %v3398_v4  ;;  %v1839_v21 = vmul.f32 %v3213_v10, %v3398_v4  ;;  %v1874_v52 = vmul.f32 %v3184_v55, %v2886_v22  ;;  %v1879_v63 = vmul.f32 %v3211_v42, %v2889_v23 }
 0x22e   :  { %989 = vst.msk [vmem:[#allocation10 + $0x20] sm:$0xff] %vm79_vm0, %v986_v47  ;;  %v1875_v6 = vadd.f32 %v1873_v11, %v1869_v12  ;;  %v1880_v50 = vmul.f32 %v3213_v10, %v2889_v23  ;;  %v1904_v59 = vmul.f32 %v3163_v61, %v2894_v25  ;;  %v1905_v7 = vmul.f32 %v3165_v19, %v2894_v25 }
 0x22f   :  { %v1840_v2 = vadd.f32 %v1838_v1, %v1834_v0  ;;  %v1841_v56 = vadd.f32 %v1839_v21, %v1835_v20  ;;  %v1876_v14 = vadd.f32 %v1874_v52, %v1870_v46  ;;  %v1908_v22 = vmul.f32 %v3170_v48, %v2897_v26 }
 0x230   :  { %v1881_v58 = vadd.f32 %v1879_v63, %v1875_v6  ;;  %v1909_v53 = vmul.f32 %v3172_v13, %v2897_v26  ;;  %v1914_v8 = vmul.f32 %v3176_v5, %v2900_v27  ;;  %v1915_v23 = vmul.f32 %v3184_v55, %v2900_v27  ;;  %v3400_v63 = vld [vmem:[#allocation35_spill] sm:$0xff] }
 0x231   :  { %v2423_v9 = vpop.eup %2422  ;;  %v1844_v15 = vadd.f32 %v1840_v2, %v2920_v34  ;;  %v1845_v25 = vadd.f32 %v1841_v56, %v2920_v34  ;;  %v1882_v29 = vadd.f32 %v1880_v50, %v1876_v14  ;;  %v1910_v41 = vadd.f32 %v1908_v22, %v1904_v59 }
 0x232   :  { %v1027_v49 = vmul.f32 %v2423_v9, %v3399_v16  ;;  %v1885_v43 = vadd.f32 %v1881_v58, %v2923_v35  ;;  %v1911_v62 = vadd.f32 %v1909_v53, %v1905_v7  ;;  %v1920_v26 = vmul.f32 %v3211_v42, %v2903_v28 }
 0x233   :  { %v1846_v51 = vsub.f32 0.0, %v1844_v15  ;;  %v1847_v39 = vsub.f32 0.0, %v1845_v25  ;;  %v1886_v60 = vadd.f32 %v1882_v29, %v2923_v35  ;;  %v1916_v27 = vadd.f32 %v1914_v8, %v1910_v41 }
 0x234   :  { %1030 = vst.msk [vmem:[#allocation10 + $0x30] sm:$0xff] %vm79_vm0, %v1027_v49  ;;  %v1887_v33 = vsub.f32 0.0, %v1885_v43  ;;  %v1917_v17 = vadd.f32 %v1915_v23, %v1911_v62  ;;  %v1921_v34 = vmul.f32 %v3213_v10, %v2903_v28  ;;  %v1945_v45 = vmul.f32 %v3163_v61, %v2908_v30  ;;  %v3401_v49 = vld [vmem:[#allocation43_spill] sm:$0xff] }
 0x235   :  { %v1848_v18 = vmul.f32 1.442695, %v1846_v51  ;;  %v1850_v3 = vmul.f32 1.442695, %v1847_v39  ;;  %v1888_v0 = vsub.f32 0.0, %v1886_v60  ;;  %v1922_v11 = vadd.f32 %v1920_v26, %v1916_v27  ;;  %v3402_v26 = vld [vmem:[#allocation42_spill] sm:$0xff] }
 0x236   :  { %v1889_v57 = vmul.f32 1.442695, %v1887_v33  ;;  %v1923_v47 = vadd.f32 %v1921_v34, %v1917_v17  ;;  %v1946_v35 = vmul.f32 %v3165_v19, %v2908_v30  ;;  %v1949_v20 = vmul.f32 %v3170_v48, %v2911_v31  ;;  %v3403_v33 = vld [vmem:[#allocation44_spill] sm:$0xff] }
 0x237   :  { %2424 = vpow2.f32 %v1848_v18  ;;  %v1891_v12 = vmul.f32 1.442695, %v1888_v0  ;;  %v1926_v46 = vadd.f32 %v1922_v11, %v2926_v36  ;;  %v1950_v28 = vmul.f32 %v3172_v13, %v2911_v31 }
 0x238   :  { %2426 = vpow2.f32 %v1850_v3  ;;  %v1927_v61 = vadd.f32 %v1923_v47, %v2926_v36  ;;  %v1951_v4 = vadd.f32 %v1949_v20, %v1945_v45  ;;  %v1955_v1 = vmul.f32 %v3176_v5, %v2914_v32 }
 0x239   :  { %2428 = vpow2.f32 %v1889_v57  ;;  %v1928_v21 = vsub.f32 0.0, %v1926_v46  ;;  %v1952_v30 = vadd.f32 %v1950_v28, %v1946_v35  ;;  %v1956_v19 = vmul.f32 %v3184_v55, %v2914_v32 }
 0x23a   :  { %2430 = vpow2.f32 %v1891_v12  ;;  %v1929_v48 = vsub.f32 0.0, %v1927_v61  ;;  %v1957_v52 = vadd.f32 %v1955_v1, %v1951_v4  ;;  %v1961_v6 = vmul.f32 %v3211_v42, %v3400_v63 }
 0x23b   :  { %v1930_v31 = vmul.f32 1.442695, %v1928_v21  ;;  %v1958_v13 = vadd.f32 %v1956_v19, %v1952_v30  ;;  %v1962_v36 = vmul.f32 %v3213_v10, %v3400_v63 }
 0x23c   :  { %v1932_v50 = vmul.f32 1.442695, %v1929_v48  ;;  %v1963_v59 = vadd.f32 %v1961_v6, %v1957_v52 }
 0x23d   :  { %2432 = vpow2.f32 %v1930_v31  ;;  %v1964_v5 = vadd.f32 %v1962_v36, %v1958_v13 }
 0x23e   :  { %2434 = vpow2.f32 %v1932_v50  ;;  %v1967_v7 = vadd.f32 %v1963_v59, %v2929_v37 }
 0x23f   :  { %v1968_v32 = vadd.f32 %v1964_v5, %v2929_v37 }
 0x240   :  { %v1969_v55 = vsub.f32 0.0, %v1967_v7 }
 0x241   :  { %v2425_v2 = vpop.eup %2424  ;;  %v1970_v56 = vsub.f32 0.0, %v1968_v32 }
 0x242   :  { %v2427_v14 = vpop.eup %2426  ;;  %v1852_v22 = vadd.f32 1.0, %v2425_v2  ;;  %v1971_v10 = vmul.f32 1.442695, %v1969_v55 }
 0x243   :  { %v2429_v42 = vpop.eup %2428  ;;  %v1853_v58 = vadd.f32 1.0, %v2427_v14  ;;  %v1973_v9 = vmul.f32 1.442695, %v1970_v56 }
 0x244   :  { %v2431_v53 = vpop.eup %2430  ;;  %2436 = vrcp.f32 %v1852_v22  ;;  %v1893_v8 = vadd.f32 1.0, %v2429_v42 }
 0x245   :  { %2438 = vrcp.f32 %v1853_v58  ;;  %v1894_v23 = vadd.f32 1.0, %v2431_v53 }
 0x246   :  { %2440 = vrcp.f32 %v1893_v8 }
 0x247   :  { %v2433_v15 = vpop.eup %2432  ;;  %2442 = vrcp.f32 %v1894_v23 }
 0x248   :  { %v2435_v25 = vpop.eup %2434  ;;  %v1934_v29 = vadd.f32 1.0, %v2433_v15  ;;  %2444 = vpow2.f32 %v1971_v10 }
 0x249   :  { %v1935_v37 = vadd.f32 1.0, %v2435_v25  ;;  %2446 = vpow2.f32 %v1973_v9 }
 0x24a   :  { %2448 = vrcp.f32 %v1934_v29 }
 0x24b   :  { %2450 = vrcp.f32 %v1935_v37 }
 0x24e   :  { %v2437_v41 = vpop.eup %2436 }
 0x24f   :  { %v2439_v16 = vpop.eup %2438  ;;  %v1856_v43 = vmul.f32 %v2437_v41, %v3401_v49 }
 0x250   :  { %v2441_v62 = vpop.eup %2440  ;;  %v1857_v51 = vmul.f32 %v2439_v16, %v3402_v26 }
 0x251   :  { %v2443_v39 = vpop.eup %2442  ;;  %1859 = vst.msk [vmem:[#allocation10 + $0x40] sm:$0xff] %vm79_vm0, %v1856_v43  ;;  %v1897_v60 = vmul.f32 %v2441_v62, %v3033_v54 }
 0x252   :  { %v2445_v27 = vpop.eup %2444  ;;  %1860 = vst.msk [vmem:[#allocation10 + $0x48] sm:$0xff] %vm79_vm0, %v1857_v51  ;;  %v1898_v17 = vmul.f32 %v2443_v39, %v3403_v33 }
 0x253   :  { %v2447_v34 = vpop.eup %2446  ;;  %1900 = vst.msk [vmem:[#allocation10 + $0x50] sm:$0xff] %vm79_vm0, %v1897_v60  ;;  %v1975_v45 = vadd.f32 1.0, %v2445_v27 }
 0x254   :  { %v2449_v18 = vpop.eup %2448  ;;  %1901 = vst.msk [vmem:[#allocation10 + $0x58] sm:$0xff] %vm79_vm0, %v1898_v17  ;;  %v1976_v3 = vadd.f32 1.0, %v2447_v34 }
 0x255   :  { %v2451_v0 = vpop.eup %2450  ;;  %v1938_v11 = vmul.f32 %v2449_v18, %v3049_v24  ;;  %2452 = vrcp.f32 %v1975_v45 }
 0x256   :  { %v1939_v57 = vmul.f32 %v2451_v0, %v3045_v44  ;;  %2454 = vrcp.f32 %v1976_v3 }
 0x257   :  { %1941 = vst.msk [vmem:[#allocation10 + $0x60] sm:$0xff] %vm79_vm0, %v1938_v11 }
 0x258   :  { %1942 = vst.msk [vmem:[#allocation10 + $0x68] sm:$0xff] %vm79_vm0, %v1939_v57 }
 0x25f   :  { %v2453_v54 = vpop.eup %2452 }
 0x260   :  { %v2455_v47 = vpop.eup %2454  ;;  %v1979_v35 = vmul.f32 %v2453_v54, %v3068_v40 }
 0x261   :  { %v1980_v20 = vmul.f32 %v2455_v47, %v3061_v38 }
 0x262   :  { %1982 = vst.msk [vmem:[#allocation10 + $0x70] sm:$0xff] %vm79_vm0, %v1979_v35 }
 0x263   :  { %1983 = vst.msk [vmem:[#allocation10 + $0x78] sm:$0xff] %vm79_vm0, %v1980_v20 }
 0x264   :  { %2515 = shalt.err (!%p2512_p10)
}
 0x265   :  { %s3404_s12 = sld [smem:[#allocation45_spill]] }
 0x26b   :  { %s2516_s13 = scalar_lea.hbm %s3404_s12, 2048 }
 0x26c   :  { %p2517_p11 = scmp.ne.s32.totalorder %s3404_s12, %s2516_s13  ;;  %p2520_p12 = scmp.lt.u32.totalorder %s2516_s13, %s3404_s12 }
 0x26e   :  { %p2522_p13 = pnand %p2520_p12, %p2517_p11 }
 0x270   :  { %2525 = shalt.err (!%p2522_p13)
}
 0x271   :  { %s2539_s16 = smov 128   ;;  %s2540_s17 = smov 8  }
 0x272   :  { %1995 = dma.vmem_to_hbm [thread:$0]  %s1990_s4, 2048, %s3404_s12, [#allocation3], %s2539_s16, %s2539_s16, %s2540_s17  }
 0x273   :  { %2532 = dma.done.wait [#allocation3], 2048  }
 0x274   :  { %2533 = vsyncadd [#allocation3], 4294965248 }
 0x275   :  { %1999 = vsyncpa [#allocation3], 1 }
 0x276   :  { %2000 = vsyncpa [#allocation4], 1 }
 0x277   :  { %2001 = vsyncpa [#allocation6], 1 }
 0x278   :  { %2002 = vsyncpa [#allocation9], 1 }

</bundles_post_ra>
